<compile_context>
chip_gen: v6e
topology: v6e:2x2x1
jax: 0.10.0
libtpu: 0.0.40
codegen_flags: <defaults>
</compile_context>

<pallas_src>
import functools

import jax
import jax.numpy as jnp
import numpy as np
from jax.experimental import pallas as pl
from jax.experimental.pallas import tpu as pltpu

NEG_SLOPE = 0.01            # F.leaky_relu default
LANE = 128
NODE_PAD = 256              # node-count padding granularity
RESIDENT_R_MAX = 24 << 20   # budget (incl. conservative 2x buffering) for resident R


def _round_up(v, m):
    return ((v + m - 1) // m) * m


def _leaky_relu(v):
    return jnp.where(v > 0, v, NEG_SLOPE * v)


def _pad2(a, rows, cols, dtype=jnp.float32):
    a = jnp.asarray(a, jnp.float32)
    return jnp.pad(a, ((0, rows - a.shape[0]), (0, cols - a.shape[1]))).astype(dtype)


# ---------------------------------------------------------------------------
# Kernel 1: per-node prep — fused linears; emits propagation RHS + local terms.
# ---------------------------------------------------------------------------
def _prep_kernel(op_w,
                 h_ref, x_ref, dc_ref, da_ref,
                 wh_ref, bh_ref, wx_ref, bx_ref,
                 wh2_ref, wx2_ref, bl_ref,
                 r_ref, l_ref):
    f32 = jnp.float32
    cd = wh2_ref.dtype  # MXU compute dtype (bf16 on the perf path, f32 for validation)
    hp = jnp.dot(h_ref[...], wh_ref[...], preferred_element_type=f32) + bh_ref[...]
    xp = jnp.dot(x_ref[...], wx_ref[...], preferred_element_type=f32) + bx_ref[...]
    # wh2 = [-cheb_w1 | cheb_w0],  wx2 = [arma_wi | arma_wr]   (each [H, 2*Op])
    hp2 = jnp.dot(hp.astype(cd), wh2_ref[...], preferred_element_type=f32)
    xp2 = jnp.dot(xp.astype(cd), wx2_ref[...], preferred_element_type=f32)
    # Propagation RHS, pre-scaled by the source-side D^-1/2 of each conv.
    # Direct slice stores (lane-128-aligned) — no concat/relayout.
    r_ref[:, :op_w] = (hp2[:, :op_w] * dc_ref[...]).astype(r_ref.dtype)
    r_ref[:, op_w:] = (xp2[:, :op_w] * da_ref[...]).astype(r_ref.dtype)
    # Local (non-propagated) terms + biases (kept f32; traffic is negligible vs A).
    l_ref[:, :op_w] = hp2[:, op_w:] + bl_ref[:, :op_w]
    l_ref[:, op_w:] = xp2[:, op_w:] + bl_ref[:, op_w:]


# ---------------------------------------------------------------------------
# Kernel 2: graph propagation (single fused N^2 matmul) + activations + Linear.
# ---------------------------------------------------------------------------
def _prop_kernel(op_w, tk, resident_r,
                 a_ref, r_ref, l_ref, dc_ref, da_ref, lw_ref, lb_ref,
                 o_ref, acc_ref):
    f32 = jnp.float32

    @pl.when(pl.program_id(1) == 0)
    def _():
        acc_ref[...] = jnp.zeros_like(acc_ref)

    if resident_r:
        # R is VMEM-resident (fetched once); slice out the current reduction tile.
        start = pl.multiple_of(pl.program_id(1) * tk, tk)
        r_tile = r_ref[pl.ds(start, tk), :]
    else:
        r_tile = r_ref[...]
    acc_ref[...] += jnp.dot(a_ref[...], r_tile, preferred_element_type=f32)

    @pl.when(pl.program_id(1) == pl.num_programs(1) - 1)
    def _():
        p = acc_ref[...]
        l = l_ref[...]
        # ChebConv(K=2, lambda_max=2): hp@W0 + (-A_hat hp)@W1 + b  (minus folded in).
        cheb = l[:, :op_w] + p[:, :op_w] * dc_ref[...]
        o1 = _leaky_relu(cheb)
        # ARMAConv(1 stack, 1 layer): relu(A_hat (xp@Wi) + xp@Wr + b).
        arma = jnp.maximum(l[:, op_w:] + p[:, op_w:] * da_ref[...], 0.0)
        # leaky_relu of a non-negative value is the identity, so o2 == arma.
        s = (o1 + arma).astype(lw_ref.dtype)   # bf16 epilogue matmul on perf path
        o_ref[...] = jnp.dot(s, lw_ref[...], preferred_element_type=f32) + lb_ref[...]


def nas_azpo_forward(h, x, edge_index, edge_weight, params, *,
                     matmul_dtype=jnp.bfloat16):
    """Returns (his, o3) exactly like NasAzpoCell.forward."""
    N = x.shape[0]
    his_dim, cur_dim = h.shape[1], x.shape[1]
    hidden_dim = params["wh"].shape[1]
    output_dim = params["lin_w"].shape[1]

    # Padded sizes (lane-dense feature dims, tile-aligned node count).
    HisP = _round_up(his_dim, LANE)
    CurP = _round_up(cur_dim, LANE)
    Hp = _round_up(hidden_dim, LANE)
    Op = _round_up(output_dim, LANE)
    TWO_OP = 2 * Op
    Np = _round_up(N, NODE_PAD)
    itemsize = jnp.dtype(matmul_dtype).itemsize

    # --- Tile selection (kernel 2): large tiles, keep >=2 row tiles for v7x. ---
    if Np % 512 == 0 and Np >= 2048:
        TM = 512
    elif Np >= 512:
        TM = 256
    else:
        TM = 128
    TK = next(t for t in (2048, 1024, 512, 256, 128) if t <= Np and Np % t == 0)
    resident_r = (2 * Np * TWO_OP * itemsize) <= RESIDENT_R_MAX
    if not resident_r and Np % 512 == 0:
        TM = 512  # fallback: amortize re-streamed R over more target rows
    TM1 = next(t for t in (1024, 512, 256, 128) if t <= Np and Np % t == 0)

    # --- O(E) plain-JAX glue: densify A[target, source] and degree vectors. ---
    src = edge_index[0]
    tgt = edge_index[1]
    w32 = edge_weight.astype(jnp.float32)
    # A built directly in the matmul dtype (no separate f32 pass + cast).
    A = jnp.zeros((Np, Np), matmul_dtype).at[tgt, src].add(
        edge_weight.astype(matmul_dtype))
    deg_cheb = jnp.zeros((Np,), jnp.float32).at[src].add(w32)   # get_laplacian degree
    deg_arma = jnp.zeros((Np,), jnp.float32).at[tgt].add(w32)   # gcn_norm degree
    dinv_c = jnp.where(deg_cheb > 0, jax.lax.rsqrt(deg_cheb), 0.0).reshape(Np, 1)
    dinv_a = jnp.where(deg_arma > 0, jax.lax.rsqrt(deg_arma), 0.0).reshape(Np, 1)

    # --- Padded inputs / weights (zero padding is mathematically inert). ---
    h_p = _pad2(h, Np, HisP, matmul_dtype)
    x_p = _pad2(x, Np, CurP, matmul_dtype)
    wh = _pad2(params["wh"], HisP, Hp, matmul_dtype)
    wx = _pad2(params["wx"], CurP, Hp, matmul_dtype)
    bh = _pad2(params["bh"], 1, Hp)
    bx = _pad2(params["bx"], 1, Hp)
    # Fold the minus sign of L_hat = -A_hat into cheb_w1 here (free).
    wh2 = jnp.concatenate([_pad2(-params["cheb_w1"], Hp, Op),
                           _pad2(params["cheb_w0"], Hp, Op)],
                          axis=1).astype(matmul_dtype)            # [Hp, 2*Op]
    wx2 = jnp.concatenate([_pad2(params["arma_wi"], Hp, Op),
                           _pad2(params["arma_wr"], Hp, Op)],
                          axis=1).astype(matmul_dtype)            # [Hp, 2*Op]
    bl = jnp.concatenate([_pad2(params["cheb_b"], 1, Op),
                          _pad2(params["arma_b"], 1, Op)], axis=1)  # [1, 2*Op] f32
    lw = _pad2(params["lin_w"], Op, Op, matmul_dtype)
    lb = _pad2(params["lin_b"], 1, Op)

    # --- Kernel 1: prep (node-row parallel, big row tiles). ---
    R, L = pl.pallas_call(
        functools.partial(_prep_kernel, Op),
        out_shape=(jax.ShapeDtypeStruct((Np, TWO_OP), matmul_dtype),
                   jax.ShapeDtypeStruct((Np, TWO_OP), jnp.float32)),
        grid=(Np // TM1,),
        in_specs=[
            pl.BlockSpec((TM1, HisP), lambda i: (i, 0)),
            pl.BlockSpec((TM1, CurP), lambda i: (i, 0)),
            pl.BlockSpec((TM1, 1), lambda i: (i, 0)),
            pl.BlockSpec((TM1, 1), lambda i: (i, 0)),
            pl.BlockSpec((HisP, Hp), lambda i: (0, 0)),
            pl.BlockSpec((1, Hp), lambda i: (0, 0)),
            pl.BlockSpec((CurP, Hp), lambda i: (0, 0)),
            pl.BlockSpec((1, Hp), lambda i: (0, 0)),
            pl.BlockSpec((Hp, TWO_OP), lambda i: (0, 0)),
            pl.BlockSpec((Hp, TWO_OP), lambda i: (0, 0)),
            pl.BlockSpec((1, TWO_OP), lambda i: (0, 0)),
        ],
        out_specs=(pl.BlockSpec((TM1, TWO_OP), lambda i: (i, 0)),
                   pl.BlockSpec((TM1, TWO_OP), lambda i: (i, 0))),
        compiler_params=pltpu.CompilerParams(
            dimension_semantics=("parallel",),
            vmem_limit_bytes=32 << 20),
    )(h_p, x_p, dinv_c, dinv_a, wh, bh, wx, bx, wh2, wx2, bl)

    # --- Kernel 2: propagation + activations + final Linear. ---
    r_rows = Np if resident_r else TK
    k2_est = (2 * TM * TK * itemsize            # A (double-buffered)
              + 2 * r_rows * TWO_OP * itemsize  # R (resident or tiled)
              + 2 * TM * TWO_OP * 4             # L
              + 2 * Op * Op * itemsize          # final linear W
              + 2 * TM * Op * 4                 # output
              + TM * TWO_OP * 4                 # acc scratch
              + 4 * TM * 4 + 4 * Op)            # dinv vectors, bias
    k2_vmem = int(min(max(k2_est + (4 << 20), 32 << 20), 50 << 20))

    r_spec = (pl.BlockSpec((Np, TWO_OP), lambda i, k: (0, 0)) if resident_r
              else pl.BlockSpec((TK, TWO_OP), lambda i, k: (k, 0)))

    o_pad = pl.pallas_call(
        functools.partial(_prop_kernel, Op, TK, resident_r),
        out_shape=jax.ShapeDtypeStruct((Np, Op), jnp.float32),
        grid=(Np // TM, Np // TK),
        in_specs=[
            pl.BlockSpec((TM, TK), lambda i, k: (i, k)),        # A tile (streamed once)
            r_spec,                                             # R: resident or tiled
            pl.BlockSpec((TM, TWO_OP), lambda i, k: (i, 0)),    # L (target rows)
            pl.BlockSpec((TM, 1), lambda i, k: (i, 0)),         # dinv_cheb (target)
            pl.BlockSpec((TM, 1), lambda i, k: (i, 0)),         # dinv_arma (target)
            pl.BlockSpec((Op, Op), lambda i, k: (0, 0)),        # final linear W
            pl.BlockSpec((1, Op), lambda i, k: (0, 0)),         # final linear b
        ],
        out_specs=pl.BlockSpec((TM, Op), lambda i, k: (i, 0)),
        scratch_shapes=[pltpu.VMEM((TM, TWO_OP), jnp.float32)],
        compiler_params=pltpu.CompilerParams(
            dimension_semantics=("parallel", "arbitrary"),
            vmem_limit_bytes=k2_vmem),
    )(A, R, L, dinv_c, dinv_a, lw, lb)

    o3 = o_pad[:N, :output_dim]
    return x, o3  # his = x (untouched), o3


def make_params(key, his_dim, cur_dim, hidden_dim, output_dim):
    ks = jax.random.split(key, 12)

    def rnd(k, shape, scale=0.1):
        return scale * jax.random.normal(k, shape, jnp.float32)

    # Linear weights stored as [in, out] (transposed vs torch's [out, in]).
    return {
        "wh": rnd(ks[0], (his_dim, hidden_dim)),
        "bh": rnd(ks[1], (1, hidden_dim)),
        "wx": rnd(ks[2], (cur_dim, hidden_dim)),
        "bx": rnd(ks[3], (1, hidden_dim)),
        "cheb_w0": rnd(ks[4], (hidden_dim, output_dim)),
        "cheb_w1": rnd(ks[5], (hidden_dim, output_dim)),
        "cheb_b": rnd(ks[6], (1, output_dim)),
        "arma_wi": rnd(ks[7], (hidden_dim, output_dim)),
        "arma_wr": rnd(ks[8], (hidden_dim, output_dim)),
        "arma_b": rnd(ks[9], (1, output_dim)),
        "lin_w": rnd(ks[10], (output_dim, output_dim)),
        "lin_b": rnd(ks[11], (1, output_dim)),
    }


def _reference(h, x, edge_index, edge_weight, params):
    """Pure-JAX (f32) reference of the same math for a correctness spot-check."""
    N = x.shape[0]
    src, tgt = edge_index[0], edge_index[1]
    w = edge_weight.astype(jnp.float32)
    A = jnp.zeros((N, N), jnp.float32).at[tgt, src].add(w)
    deg_c = jnp.zeros((N,), jnp.float32).at[src].add(w)   # ChebConv degree
    deg_a = jnp.zeros((N,), jnp.float32).at[tgt].add(w)   # ARMAConv degree
    dc = jnp.where(deg_c > 0, 1.0 / jnp.sqrt(deg_c), 0.0)
    da = jnp.where(deg_a > 0, 1.0 / jnp.sqrt(deg_a), 0.0)
    A_cheb = dc[:, None] * A * dc[None, :]
    A_arma = da[:, None] * A * da[None, :]
    hp = h @ params["wh"] + params["bh"]
    xp = x @ params["wx"] + params["bx"]
    cheb = (hp @ params["cheb_w0"]
            + (-(A_cheb @ hp)) @ params["cheb_w1"] + params["cheb_b"])
    o1 = jnp.where(cheb > 0, cheb, NEG_SLOPE * cheb)
    arma = jnp.maximum(A_arma @ (xp @ params["arma_wi"]) + xp @ params["arma_wr"]
                       + params["arma_b"], 0.0)
    o2 = arma  # leaky_relu(relu(x)) == relu(x)
    return (o1 + o2) @ params["lin_w"] + params["lin_b"]


if __name__ == "__main__":
    N, his_dim, cur_dim, hidden_dim, output_dim = 16, 8, 12, 32, 16

    key = jax.random.PRNGKey(0)
    k_h, k_x, k_w, k_p = jax.random.split(key, 4)
    h = jax.random.normal(k_h, (N, his_dim), jnp.float32)
    x = jax.random.normal(k_x, (N, cur_dim), jnp.float32)

    # Undirected ring graph (symmetric weights).
    i = np.arange(N)
    src = np.concatenate([i, (i + 1) % N])
    tgt = np.concatenate([(i + 1) % N, i])
    edge_index = jnp.asarray(np.stack([src, tgt]), jnp.int32)          # [2, 2N]
    w_half = 0.5 + jax.random.uniform(k_w, (N,), jnp.float32)
    edge_weight = jnp.concatenate([w_half, w_half])                    # symmetric

    params = make_params(k_p, his_dim, cur_dim, hidden_dim, output_dim)
    ref = _reference(h, x, edge_index, edge_weight, params)

    # f32 propagation path — tight check.
    his, o3 = nas_azpo_forward(h, x, edge_index, edge_weight, params,
                               matmul_dtype=jnp.float32)
    jax.block_until_ready((his, o3))
    assert his.shape == (N, cur_dim) and o3.shape == (N, output_dim)
    np.testing.assert_allclose(np.asarray(o3), np.asarray(ref), rtol=1e-4, atol=1e-4)
    np.testing.assert_allclose(np.asarray(his), np.asarray(x))

    # Default bf16 propagation path (v5e/v6e/v7x perf) — loose check.
    _, o3_bf16 = nas_azpo_forward(h, x, edge_index, edge_weight, params)
    jax.block_until_ready(o3_bf16)
    assert o3_bf16.shape == (N, output_dim)
    np.testing.assert_allclose(np.asarray(o3_bf16), np.asarray(ref),
                               rtol=5e-2, atol=5e-2)

    print("KERNEL_OK")
</pallas_src>

<mosaic_0001>
module attributes {stable_mosaic.version = 11 : i64} {
  func.func @_prep_kernel(%arg0: i32, %arg1: memref<256x128xf32, #tpu.memory_space<vmem>>, %arg2: memref<256x128xf32, #tpu.memory_space<vmem>>, %arg3: memref<256x1xf32, #tpu.memory_space<vmem>>, %arg4: memref<256x1xf32, #tpu.memory_space<vmem>>, %arg5: memref<128x128xf32, #tpu.memory_space<vmem>>, %arg6: memref<1x128xf32, #tpu.memory_space<vmem>>, %arg7: memref<128x128xf32, #tpu.memory_space<vmem>>, %arg8: memref<1x128xf32, #tpu.memory_space<vmem>>, %arg9: memref<128x256xf32, #tpu.memory_space<vmem>>, %arg10: memref<128x256xf32, #tpu.memory_space<vmem>>, %arg11: memref<1x256xf32, #tpu.memory_space<vmem>>, %arg12: memref<256x256xf32, #tpu.memory_space<vmem>>, %arg13: memref<256x256xf32, #tpu.memory_space<vmem>>) attributes {dimension_semantics = [#tpu.dimension_semantics<parallel>], iteration_bounds = array<i64: 1>, scalar_prefetch = 0 : i64, scratch_operands = 0 : i64, tpu.core_type = #tpu.core_type<tc>, window_params = [{transform_indices = @transform_0, window_bounds = array<i64: 256, 128>}, {transform_indices = @transform_1, window_bounds = array<i64: 256, 128>}, {transform_indices = @transform_2, window_bounds = array<i64: 256, 1>}, {transform_indices = @transform_3, window_bounds = array<i64: 256, 1>}, {pipeline_mode = #tpu.pipeline_mode<synchronous>, transform_indices = @transform_4, window_bounds = array<i64: 128, 128>}, {pipeline_mode = #tpu.pipeline_mode<synchronous>, transform_indices = @transform_5, window_bounds = array<i64: 1, 128>}, {pipeline_mode = #tpu.pipeline_mode<synchronous>, transform_indices = @transform_6, window_bounds = array<i64: 128, 128>}, {pipeline_mode = #tpu.pipeline_mode<synchronous>, transform_indices = @transform_7, window_bounds = array<i64: 1, 128>}, {pipeline_mode = #tpu.pipeline_mode<synchronous>, transform_indices = @transform_8, window_bounds = array<i64: 128, 256>}, {pipeline_mode = #tpu.pipeline_mode<synchronous>, transform_indices = @transform_9, window_bounds = array<i64: 128, 256>}, {pipeline_mode = #tpu.pipeline_mode<synchronous>, transform_indices = @transform_10, window_bounds = array<i64: 1, 256>}, {transform_indices = @transform_11, window_bounds = array<i64: 256, 256>}, {transform_indices = @transform_12, window_bounds = array<i64: 256, 256>}]} {
    %c0 = arith.constant 0 : index
    %c0_0 = arith.constant 0 : index
    %0 = vector.load %arg1[%c0, %c0_0] : memref<256x128xf32, #tpu.memory_space<vmem>>, vector<256x128xf32>
    %c0_1 = arith.constant 0 : index
    %c0_2 = arith.constant 0 : index
    %1 = vector.load %arg5[%c0_1, %c0_2] : memref<128x128xf32, #tpu.memory_space<vmem>>, vector<128x128xf32>
    %cst = arith.constant dense<0.000000e+00> : vector<256x128xf32>
    %2 = tpu.matmul %0, %1, %cst {dimension_numbers = #tpu.dot_dimension_numbers<[1], [0], [0], [1], [0, 0, 1, 1], [], []>} : vector<256x128xf32>, vector<128x128xf32>, vector<256x128xf32> -> vector<256x128xf32>
    %c0_3 = arith.constant 0 : index
    %c0_4 = arith.constant 0 : index
    %3 = vector.load %arg6[%c0_3, %c0_4] : memref<1x128xf32, #tpu.memory_space<vmem>>, vector<1x128xf32>
    %4 = vector.broadcast %3 : vector<1x128xf32> to vector<256x128xf32>
    %5 = arith.addf %2, %4 : vector<256x128xf32>
    %c0_5 = arith.constant 0 : index
    %c0_6 = arith.constant 0 : index
    %6 = vector.load %arg2[%c0_5, %c0_6] : memref<256x128xf32, #tpu.memory_space<vmem>>, vector<256x128xf32>
    %c0_7 = arith.constant 0 : index
    %c0_8 = arith.constant 0 : index
    %7 = vector.load %arg7[%c0_7, %c0_8] : memref<128x128xf32, #tpu.memory_space<vmem>>, vector<128x128xf32>
    %cst_9 = arith.constant dense<0.000000e+00> : vector<256x128xf32>
    %8 = tpu.matmul %6, %7, %cst_9 {dimension_numbers = #tpu.dot_dimension_numbers<[1], [0], [0], [1], [0, 0, 1, 1], [], []>} : vector<256x128xf32>, vector<128x128xf32>, vector<256x128xf32> -> vector<256x128xf32>
    %c0_10 = arith.constant 0 : index
    %c0_11 = arith.constant 0 : index
    %9 = vector.load %arg8[%c0_10, %c0_11] : memref<1x128xf32, #tpu.memory_space<vmem>>, vector<1x128xf32>
    %10 = vector.broadcast %9 : vector<1x128xf32> to vector<256x128xf32>
    %11 = arith.addf %8, %10 : vector<256x128xf32>
    %c0_12 = arith.constant 0 : index
    %c0_13 = arith.constant 0 : index
    %12 = vector.load %arg9[%c0_12, %c0_13] : memref<128x256xf32, #tpu.memory_space<vmem>>, vector<128x256xf32>
    %cst_14 = arith.constant dense<0.000000e+00> : vector<256x256xf32>
    %13 = tpu.matmul %5, %12, %cst_14 {dimension_numbers = #tpu.dot_dimension_numbers<[1], [0], [0], [1], [0, 0, 1, 1], [], []>} : vector<256x128xf32>, vector<128x256xf32>, vector<256x256xf32> -> vector<256x256xf32>
    %c0_15 = arith.constant 0 : index
    %c0_16 = arith.constant 0 : index
    %14 = vector.load %arg10[%c0_15, %c0_16] : memref<128x256xf32, #tpu.memory_space<vmem>>, vector<128x256xf32>
    %cst_17 = arith.constant dense<0.000000e+00> : vector<256x256xf32>
    %15 = tpu.matmul %11, %14, %cst_17 {dimension_numbers = #tpu.dot_dimension_numbers<[1], [0], [0], [1], [0, 0, 1, 1], [], []>} : vector<256x128xf32>, vector<128x256xf32>, vector<256x256xf32> -> vector<256x256xf32>
    %16 = vector.extract_strided_slice %13 {offsets = [0, 0], sizes = [256, 128], strides = [1, 1]} : vector<256x256xf32> to vector<256x128xf32>
    %c0_18 = arith.constant 0 : index
    %c0_19 = arith.constant 0 : index
    %17 = vector.load %arg3[%c0_18, %c0_19] : memref<256x1xf32, #tpu.memory_space<vmem>>, vector<256x1xf32>
    %18 = vector.broadcast %17 : vector<256x1xf32> to vector<256x128xf32>
    %19 = arith.mulf %16, %18 : vector<256x128xf32>
    %c0_20 = arith.constant 0 : index
    %c0_21 = arith.constant 0 : index
    %20 = vector.load %arg12[%c0_20, %c0_21] : memref<256x256xf32, #tpu.memory_space<vmem>>, vector<256x128xf32>
    tpu.vector_store %arg12[%c0_20, %c0_21], %19 {strides = array<i32>} : memref<256x256xf32, #tpu.memory_space<vmem>>, vector<256x128xf32>,
    %21 = vector.extract_strided_slice %15 {offsets = [0, 0], sizes = [256, 128], strides = [1, 1]} : vector<256x256xf32> to vector<256x128xf32>
    %c0_22 = arith.constant 0 : index
    %c0_23 = arith.constant 0 : index
    %22 = vector.load %arg4[%c0_22, %c0_23] : memref<256x1xf32, #tpu.memory_space<vmem>>, vector<256x1xf32>
    %23 = vector.broadcast %22 : vector<256x1xf32> to vector<256x128xf32>
    %24 = arith.mulf %21, %23 : vector<256x128xf32>
    %c0_24 = arith.constant 0 : index
    %c128 = arith.constant 128 : index
    %25 = vector.load %arg12[%c0_24, %c128] : memref<256x256xf32, #tpu.memory_space<vmem>>, vector<256x128xf32>
    tpu.vector_store %arg12[%c0_24, %c128], %24 {strides = array<i32>} : memref<256x256xf32, #tpu.memory_space<vmem>>, vector<256x128xf32>,
    %26 = vector.extract_strided_slice %13 {offsets = [0, 128], sizes = [256, 128], strides = [1, 1]} : vector<256x256xf32> to vector<256x128xf32>
    %c0_25 = arith.constant 0 : index
    %c0_26 = arith.constant 0 : index
    %27 = vector.load %arg11[%c0_25, %c0_26] : memref<1x256xf32, #tpu.memory_space<vmem>>, vector<1x128xf32>
    %28 = vector.broadcast %27 : vector<1x128xf32> to vector<256x128xf32>
    %29 = arith.addf %26, %28 : vector<256x128xf32>
    %c0_27 = arith.constant 0 : index
    %c0_28 = arith.constant 0 : index
    %30 = vector.load %arg13[%c0_27, %c0_28] : memref<256x256xf32, #tpu.memory_space<vmem>>, vector<256x128xf32>
    tpu.vector_store %arg13[%c0_27, %c0_28], %29 {strides = array<i32>} : memref<256x256xf32, #tpu.memory_space<vmem>>, vector<256x128xf32>,
    %31 = vector.extract_strided_slice %15 {offsets = [0, 128], sizes = [256, 128], strides = [1, 1]} : vector<256x256xf32> to vector<256x128xf32>
    %c0_29 = arith.constant 0 : index
    %c128_30 = arith.constant 128 : index
    %32 = vector.load %arg11[%c0_29, %c128_30] : memref<1x256xf32, #tpu.memory_space<vmem>>, vector<1x128xf32>
    %33 = vector.broadcast %32 : vector<1x128xf32> to vector<256x128xf32>
    %34 = arith.addf %31, %33 : vector<256x128xf32>
    %c0_31 = arith.constant 0 : index
    %c128_32 = arith.constant 128 : index
    %35 = vector.load %arg13[%c0_31, %c128_32] : memref<256x256xf32, #tpu.memory_space<vmem>>, vector<256x128xf32>
    tpu.vector_store %arg13[%c0_31, %c128_32], %34 {strides = array<i32>} : memref<256x256xf32, #tpu.memory_space<vmem>>, vector<256x128xf32>,
    return
  }
  func.func @transform_0(%arg0: i32) -> (i32, i32) {
    %c0_i32 = arith.constant 0 : i32
    %c0_i32_0 = arith.constant 0 : i32
    return %arg0, %c0_i32 : i32, i32
  }
  func.func @transform_1(%arg0: i32) -> (i32, i32) {
    %c0_i32 = arith.constant 0 : i32
    %c0_i32_0 = arith.constant 0 : i32
    return %arg0, %c0_i32 : i32, i32
  }
  func.func @transform_2(%arg0: i32) -> (i32, i32) {
    %c0_i32 = arith.constant 0 : i32
    %c0_i32_0 = arith.constant 0 : i32
    return %arg0, %c0_i32 : i32, i32
  }
  func.func @transform_3(%arg0: i32) -> (i32, i32) {
    %c0_i32 = arith.constant 0 : i32
    %c0_i32_0 = arith.constant 0 : i32
    return %arg0, %c0_i32 : i32, i32
  }
  func.func @transform_4(%arg0: i32) -> (i32, i32) {
    %c0_i32 = arith.constant 0 : i32
    %c0_i32_0 = arith.constant 0 : i32
    %c0_i32_1 = arith.constant 0 : i32
    return %c0_i32, %c0_i32_0 : i32, i32
  }
  func.func @transform_5(%arg0: i32) -> (i32, i32) {
    %c0_i32 = arith.constant 0 : i32
    %c0_i32_0 = arith.constant 0 : i32
    %c0_i32_1 = arith.constant 0 : i32
    return %c0_i32, %c0_i32_0 : i32, i32
  }
  func.func @transform_6(%arg0: i32) -> (i32, i32) {
    %c0_i32 = arith.constant 0 : i32
    %c0_i32_0 = arith.constant 0 : i32
    %c0_i32_1 = arith.constant 0 : i32
    return %c0_i32, %c0_i32_0 : i32, i32
  }
  func.func @transform_7(%arg0: i32) -> (i32, i32) {
    %c0_i32 = arith.constant 0 : i32
    %c0_i32_0 = arith.constant 0 : i32
    %c0_i32_1 = arith.constant 0 : i32
    return %c0_i32, %c0_i32_0 : i32, i32
  }
  func.func @transform_8(%arg0: i32) -> (i32, i32) {
    %c0_i32 = arith.constant 0 : i32
    %c0_i32_0 = arith.constant 0 : i32
    %c0_i32_1 = arith.constant 0 : i32
    return %c0_i32, %c0_i32_0 : i32, i32
  }
  func.func @transform_9(%arg0: i32) -> (i32, i32) {
    %c0_i32 = arith.constant 0 : i32
    %c0_i32_0 = arith.constant 0 : i32
    %c0_i32_1 = arith.constant 0 : i32
    return %c0_i32, %c0_i32_0 : i32, i32
  }
  func.func @transform_10(%arg0: i32) -> (i32, i32) {
    %c0_i32 = arith.constant 0 : i32
    %c0_i32_0 = arith.constant 0 : i32
    %c0_i32_1 = arith.constant 0 : i32
    return %c0_i32, %c0_i32_0 : i32, i32
  }
  func.func @transform_11(%arg0: i32) -> (i32, i32) {
    %c0_i32 = arith.constant 0 : i32
    %c0_i32_0 = arith.constant 0 : i32
    return %arg0, %c0_i32 : i32, i32
  }
  func.func @transform_12(%arg0: i32) -> (i32, i32) {
    %c0_i32 = arith.constant 0 : i32
    %c0_i32_0 = arith.constant 0 : i32
    return %arg0, %c0_i32 : i32, i32
  }
}

</mosaic_0001>

<bundles_post_ra>
// kernel: tpu_custom_call.1
= control target key start
LH: loop header
LB: loop body
LE: loop exit
PB: predicated region body
PF: predicated region fallthrough
CT: control target
= control target key end

     0   :  { %18 = vsyncpa [#allocation3], 0  ;;  %s3127_s0 = inlined_call_operand.vmem [shape: f32[256,128], index: 0, kind: input, shape index: {}]   ;;  %s3128_s1 = inlined_call_operand.vmem [shape: f32[256,128], index: 1, kind: input, shape index: {}]   ;;  %s3129_s2 = inlined_call_operand.vmem [shape: f32[256,1], index: 2, kind: input, shape index: {}]   ;;  %s3130_s3 = inlined_call_operand.vmem [shape: f32[256,1], index: 3, kind: input, shape index: {}]   ;;  %s3131_s4 = inlined_call_operand.hbm [shape: f32[128,128], index: 4, kind: input, shape index: {}]   ;;  %s3132_s5 = inlined_call_operand.vmem [shape: f32[1,128], index: 5, kind: input, shape index: {}]   ;;  %s3133_s6 = inlined_call_operand.hbm [shape: f32[128,128], index: 6, kind: input, shape index: {}]   ;;  %s3134_s7 = inlined_call_operand.vmem [shape: f32[1,128], index: 7, kind: input, shape index: {}]   ;;  %s3135_s8 = inlined_call_operand.hbm [shape: f32[128,256], index: 8, kind: input, shape index: {}]   ;;  %s3136_s9 = inlined_call_operand.hbm [shape: f32[128,256], index: 9, kind: input, shape index: {}]   ;;  %s3137_s10 = inlined_call_operand.vmem [shape: f32[1,256], index: 10, kind: input, shape index: {}]   ;;  %s3138_s11 = inlined_call_operand.hbm [shape: f32[256,256], index: 11, kind: output, shape index: {0}]   ;;  %s3139_s12 = inlined_call_operand.hbm [shape: f32[256,256], index: 12, kind: output, shape index: {1}]  }
   0x1   :  { %19 = vsyncpa [#allocation6], 0 }
   0x2   :  { %20 = vsyncpa [#allocation9], 0 }
   0x3   :  { %21 = vsyncpa [#allocation4], 0 }
   0x4   :  { %22 = vsyncpa [#allocation12], 0  ;;  %s2328_s21 = smov [#allocation5]   ;;  %s2329_s23 = smov [#allocation2]  }
   0x5   :  { %s50_s22 = sshll.u32 %s2328_s21, 4  ;;  %s36_s24 = sshll.u32 %s2329_s23, 4  ;;  %s51_s22 = int_to_ptr.vmem [resolvable:$true] %s50_s22  ;;  %s37_s24 = int_to_ptr.vmem [resolvable:$true] %s36_s24 }
   0x6   :  { %s2206_s25 = scalar_lea.vmem %s51_s22, 2048  ;;  %p2211_p1 = scmp.lt.s32.totalorder %s51_s22, %s51_s22 }
   0x7   :  { %p2207_p0 = scmp.ne.s32.totalorder %s51_s22, %s2206_s25  ;;  %p2212_p2 = scmp.lt.s32.totalorder %s2206_s25, %s2206_s25 }
   0x9   :  { %p2213_p3 = por %p2212_p2, %p2211_p1 }
   0xb   :  { %p2214_p4 = pnand %p2213_p3, %p2207_p0 }
   0xd   :  { %2217 = shalt.err (!%p2214_p4)
}
   0xe   :  { %s2330_s26 = smov 128   ;;  %s2331_s27 = smov 8  }
   0xf   :  { %56 = dma.hbm_to_vmem [thread:$0]  %s3133_s6, 2048, %s51_s22, [#allocation6], %s2330_s26, %s2330_s26, %s2331_s27  }
  0x10   :  { %s2226_s30 = scalar_lea.vmem %s37_s24, 2048  ;;  %p2231_p6 = scmp.lt.s32.totalorder %s37_s24, %s37_s24 }
  0x11   :  { %p2227_p5 = scmp.ne.s32.totalorder %s37_s24, %s2226_s30  ;;  %p2232_p7 = scmp.lt.s32.totalorder %s2226_s30, %s2226_s30 }
  0x13   :  { %p2233_p8 = por %p2232_p7, %p2231_p6 }
  0x15   :  { %p2234_p9 = pnand %p2233_p8, %p2227_p5 }
  0x17   :  { %2237 = shalt.err (!%p2234_p9)
}
  0x18   :  { %42 = dma.hbm_to_vmem [thread:$0]  %s3131_s4, 2048, %s37_s24, [#allocation3], %s2330_s26, %s2330_s26, %s2331_s27  }
  0x19   :  { %s2332_s15 = smov [#allocation7]  }
  0x1a   :  { %s64_s16 = sshll.u32 %s2332_s15, 4  ;;  %s65_s16 = int_to_ptr.vmem [resolvable:$true] %s64_s16 }
  0x1b   :  { %s2246_s17 = scalar_lea.vmem %s65_s16, 4096  ;;  %p2251_p11 = scmp.lt.s32.totalorder %s65_s16, %s65_s16 }
  0x1c   :  { %p2247_p10 = scmp.ne.s32.totalorder %s65_s16, %s2246_s17  ;;  %p2252_p12 = scmp.lt.s32.totalorder %s2246_s17, %s2246_s17 }
  0x1e   :  { %p2253_p13 = por %p2252_p12, %p2251_p11 }
  0x20   :  { %p2254_p0 = pnand %p2253_p13, %p2247_p10 }
  0x22   :  { %2257 = shalt.err (!%p2254_p0)
}
  0x23   :  { %s2333_s6 = smov 256   ;;  %s2334_s18 = smov 16  }
  0x24   :  { %70 = dma.hbm_to_vmem [thread:$0]  %s3135_s8, 4096, %s65_s16, [#allocation6], %s2333_s6, %s2333_s6, %s2334_s18  }
  0x25   :  { %s2335_s4 = smov [#allocation8]  }
  0x26   :  { %s76_s21 = sshll.u32 %s2335_s4, 4  ;;  %s77_s21 = int_to_ptr.vmem [resolvable:$true] %s76_s21 }
  0x27   :  { %s2266_s22 = scalar_lea.vmem %s77_s21, 4096  ;;  %p2271_p2 = scmp.lt.s32.totalorder %s77_s21, %s77_s21 }
  0x28   :  { %p2267_p1 = scmp.ne.s32.totalorder %s77_s21, %s2266_s22  ;;  %p2272_p3 = scmp.lt.s32.totalorder %s2266_s22, %s2266_s22 }
  0x2a   :  { %p2273_p4 = por %p2272_p3, %p2271_p2 }
  0x2c   :  { %p2274_p5 = pnand %p2273_p4, %p2267_p1 }
  0x2e   :  { %2277 = shalt.err (!%p2274_p5)
}
  0x2f   :  { %82 = dma.hbm_to_vmem [thread:$0]  %s3136_s9, 4096, %s77_s21, [#allocation9], %s2333_s6, %s2333_s6, %s2334_s18  }
  0x30   :  { %2318 = dma.done.wait [#allocation3], 2048  }
  0x31   :  { %2319 = vsyncadd [#allocation3], 4294965248 }
  0x32   :  { %2320 = dma.done.wait [#allocation6], 6144  }
  0x33   :  { %2321 = vsyncadd [#allocation6], 4294961152 }
  0x34   :  { %2322 = dma.done.wait [#allocation9], 4096  }
  0x35   :  { %2323 = vsyncadd [#allocation9], 4294963200  ;;  %v2336_v0 = vmov 0   ;;  %v144_v1 = vld [vmem:[#allocation2 + $0x78] sm:$0xff]  ;;  %v143_v3 = vld [vmem:[#allocation2 + $0x70] sm:$0xff]  ;;  %s2339_s14 = smov [#allocation11]  }
  0x36   :  { %2197 = vset.pattern.permute.xlu1 %v2336_v0  ;;  %2196 = vset.pattern.permute.xlu0 %v2336_v0  ;;  %v424_v2 = vld [vmem:[#allocation5 + $0x78] sm:$0xff]  ;;  %v423_v4 = vld [vmem:[#allocation5 + $0x70] sm:$0xff]  ;;  %v142_v5 = vld [vmem:[#allocation2 + $0x68] sm:$0xff]  ;;  %s1906_s15 = sshll.u32 %s2339_s14, 4  ;;  %s1907_s15 = int_to_ptr.vmem [resolvable:$true] %s1906_s15 }
  0x37   :  { %2024 = vmatprep.subr.mxu0 %v144_v1  ;;  %2104 = vmatprep.subr.mxu1 %v424_v2  ;;  %v422_v6 = vld [vmem:[#allocation5 + $0x68] sm:$0xff]  ;;  %v141_v7 = vld [vmem:[#allocation2 + $0x60] sm:$0xff]  ;;  %v140_v9 = vld [vmem:[#allocation2 + $0x58] sm:$0xff] }
  0x38   :  { %2025 = vmatpush3.msra.mxu0 %v144_v1  ;;  %2105 = vmatpush3.msra.mxu1 %v424_v2  ;;  %v421_v8 = vld [vmem:[#allocation5 + $0x60] sm:$0xff]  ;;  %v420_v10 = vld [vmem:[#allocation5 + $0x58] sm:$0xff]  ;;  %v139_v11 = vld [vmem:[#allocation2 + $0x50] sm:$0xff] }
  0x39   :  { %2026 = vmatprep.subr.mxu0 %v143_v3  ;;  %2106 = vmatprep.subr.mxu1 %v423_v4  ;;  %v419_v12 = vld [vmem:[#allocation5 + $0x50] sm:$0xff]  ;;  %v138_v13 = vld [vmem:[#allocation2 + $0x48] sm:$0xff]  ;;  %v137_v15 = vld [vmem:[#allocation2 + $0x40] sm:$0xff] }
  0x3a   :  { %2027 = vmatpush3.msra.mxu0 %v143_v3  ;;  %2107 = vmatpush3.msra.mxu1 %v423_v4  ;;  %v418_v14 = vld [vmem:[#allocation5 + $0x48] sm:$0xff]  ;;  %v417_v16 = vld [vmem:[#allocation5 + $0x40] sm:$0xff]  ;;  %v136_v17 = vld [vmem:[#allocation2 + $0x38] sm:$0xff] }
  0x3b   :  { %2028 = vmatprep.subr.mxu0 %v142_v5  ;;  %2108 = vmatprep.subr.mxu1 %v422_v6  ;;  %v416_v18 = vld [vmem:[#allocation5 + $0x38] sm:$0xff]  ;;  %v135_v19 = vld [vmem:[#allocation2 + $0x30] sm:$0xff]  ;;  %v134_v21 = vld [vmem:[#allocation2 + $0x28] sm:$0xff] }
  0x3c   :  { %2029 = vmatpush3.msra.mxu0 %v142_v5  ;;  %2109 = vmatpush3.msra.mxu1 %v422_v6  ;;  %v415_v20 = vld [vmem:[#allocation5 + $0x30] sm:$0xff]  ;;  %v414_v22 = vld [vmem:[#allocation5 + $0x28] sm:$0xff]  ;;  %v133_v23 = vld [vmem:[#allocation2 + $0x20] sm:$0xff] }
  0x3d   :  { %2030 = vmatprep.subr.mxu0 %v141_v7  ;;  %2110 = vmatprep.subr.mxu1 %v421_v8  ;;  %v413_v24 = vld [vmem:[#allocation5 + $0x20] sm:$0xff]  ;;  %v132_v25 = vld [vmem:[#allocation2 + $0x18] sm:$0xff]  ;;  %v131_v27 = vld [vmem:[#allocation2 + $0x10] sm:$0xff] }
  0x3e   :  { %2031 = vmatpush3.msra.mxu0 %v141_v7  ;;  %2111 = vmatpush3.msra.mxu1 %v421_v8  ;;  %v412_v26 = vld [vmem:[#allocation5 + $0x18] sm:$0xff]  ;;  %v411_v28 = vld [vmem:[#allocation5 + $0x10] sm:$0xff]  ;;  %v130_v29 = vld [vmem:[#allocation2 + $0x8] sm:$0xff] }
  0x3f   :  { %2032 = vmatprep.subr.mxu0 %v140_v9  ;;  %2112 = vmatprep.subr.mxu1 %v420_v10  ;;  %v410_v30 = vld [vmem:[#allocation5 + $0x8] sm:$0xff]  ;;  %v129_v31 = vld [vmem:[#allocation2] sm:$0xff]  ;;  %v99_v37 = vld [vmem:[%s3127_s0 + $0x10] sm:$0xff] }
  0x40   :  { %2033 = vmatpush3.msra.mxu0 %v140_v9  ;;  %2113 = vmatpush3.msra.mxu1 %v420_v10  ;;  %v409_v32 = vld [vmem:[#allocation5] sm:$0xff]  ;;  %v98_v35 = vld [vmem:[%s3127_s0 + $0x8] sm:$0xff]  ;;  %v379_v38 = vld [vmem:[%s3128_s1 + $0x10] sm:$0xff] }
  0x41   :  { %2034 = vmatprep.subr.mxu0 %v139_v11  ;;  %2114 = vmatprep.subr.mxu1 %v419_v12  ;;  %v97_v33 = vld [vmem:[%s3127_s0] sm:$0xff]  ;;  %v378_v36 = vld [vmem:[%s3128_s1 + $0x8] sm:$0xff]  ;;  %v688_v39 = vld [vmem:[#allocation7 + $0xf8] sm:$0xff] }
  0x42   :  { %2035 = vmatpush3.msra.mxu0 %v139_v11  ;;  %2115 = vmatpush3.msra.mxu1 %v419_v12  ;;  %v377_v34 = vld [vmem:[%s3128_s1] sm:$0xff]  ;;  %v977_v40 = vld [vmem:[#allocation8 + $0xf8] sm:$0xff]  ;;  %v687_v41 = vld [vmem:[#allocation7 + $0xf0] sm:$0xff] }
  0x43   :  { %2036 = vmatprep.subr.mxu0 %v138_v13  ;;  %2116 = vmatprep.subr.mxu1 %v418_v14  ;;  %v976_v42 = vld [vmem:[#allocation8 + $0xf0] sm:$0xff]  ;;  %v100_v43 = vld [vmem:[%s3127_s0 + $0x18] sm:$0xff]  ;;  %v101_v45 = vld [vmem:[%s3127_s0 + $0x20] sm:$0xff] }
  0x44   :  { %2037 = vmatpush3.msra.mxu0 %v138_v13  ;;  %2117 = vmatpush3.msra.mxu1 %v418_v14  ;;  %v380_v44 = vld [vmem:[%s3128_s1 + $0x18] sm:$0xff]  ;;  %v381_v46 = vld [vmem:[%s3128_s1 + $0x20] sm:$0xff]  ;;  %v686_v47 = vld [vmem:[#allocation7 + $0xe8] sm:$0xff] }
  0x45   :  { %2038 = vmatprep.subr.mxu0 %v137_v15  ;;  %2118 = vmatprep.subr.mxu1 %v417_v16  ;;  %v975_v48 = vld [vmem:[#allocation8 + $0xe8] sm:$0xff]  ;;  %v685_v49 = vld [vmem:[#allocation7 + $0xe0] sm:$0xff]  ;;  %v103_v53 = vld [vmem:[%s3127_s0 + $0x30] sm:$0xff] }
  0x46   :  { %2039 = vmatpush3.msra.mxu0 %v137_v15  ;;  %2119 = vmatpush3.msra.mxu1 %v417_v16  ;;  %v974_v50 = vld [vmem:[#allocation8 + $0xe0] sm:$0xff]  ;;  %v102_v51 = vld [vmem:[%s3127_s0 + $0x28] sm:$0xff]  ;;  %v383_v54 = vld [vmem:[%s3128_s1 + $0x30] sm:$0xff] }
  0x47   :  { %2040 = vmatprep.subr.mxu0 %v136_v17  ;;  %2120 = vmatprep.subr.mxu1 %v416_v18  ;;  %v382_v52 = vld [vmem:[%s3128_s1 + $0x28] sm:$0xff]  ;;  %v684_v55 = vld [vmem:[#allocation7 + $0xd8] sm:$0xff]  ;;  %v683_v57 = vld [vmem:[#allocation7 + $0xd0] sm:$0xff] }
  0x48   :  { %2041 = vmatpush3.msra.mxu0 %v136_v17  ;;  %2121 = vmatpush3.msra.mxu1 %v416_v18  ;;  %v973_v56 = vld [vmem:[#allocation8 + $0xd8] sm:$0xff]  ;;  %v972_v58 = vld [vmem:[#allocation8 + $0xd0] sm:$0xff]  ;;  %v105_v61 = vld [vmem:[%s3127_s0 + $0x40] sm:$0xff] }
  0x49   :  { %2042 = vmatprep.subr.mxu0 %v135_v19  ;;  %2122 = vmatprep.subr.mxu1 %v415_v20  ;;  %v104_v59 = vld [vmem:[%s3127_s0 + $0x38] sm:$0xff]  ;;  %v385_v62 = vld [vmem:[%s3128_s1 + $0x40] sm:$0xff]  ;;  %v1237_v63 = vld [vmem:[%s3129_s2 + $0x10] sm:$0xff] }
  0x4a   :  { %2043 = vmatpush3.msra.mxu0 %v135_v19  ;;  %2123 = vmatpush3.msra.mxu1 %v415_v20  ;;  %v384_v60 = vld [vmem:[%s3128_s1 + $0x38] sm:$0xff]  ;;  %v1235_v0 = vld [vmem:[%s3129_s2] sm:$0xff]  ;;  %v682_v1 = vld [vmem:[#allocation7 + $0xc8] sm:$0xff] }
  0x4b   :  { %2044 = vmatprep.subr.mxu0 %v134_v21  ;;  %2124 = vmatprep.subr.mxu1 %v414_v22  ;;  %v971_v2 = vld [vmem:[#allocation8 + $0xc8] sm:$0xff]  ;;  %v107_v5 = vld [vmem:[%s3127_s0 + $0x50] sm:$0xff]  ;;  %v681_v7 = vld [vmem:[#allocation7 + $0xc0] sm:$0xff] }
  0x4c   :  { %2045 = vmatpush3.msra.mxu0 %v134_v21  ;;  %2125 = vmatpush3.msra.mxu1 %v414_v22  ;;  %v106_v3 = vld [vmem:[%s3127_s0 + $0x48] sm:$0xff]  ;;  %v387_v6 = vld [vmem:[%s3128_s1 + $0x50] sm:$0xff]  ;;  %v970_v8 = vld [vmem:[#allocation8 + $0xc0] sm:$0xff] }
  0x4d   :  { %2046 = vmatprep.subr.mxu0 %v133_v23  ;;  %2126 = vmatprep.subr.mxu1 %v413_v24  ;;  %v386_v4 = vld [vmem:[%s3128_s1 + $0x48] sm:$0xff]  ;;  %v1238_v9 = vld [vmem:[%s3129_s2 + $0x18] sm:$0xff]  ;;  %v109_v13 = vld [vmem:[%s3127_s0 + $0x60] sm:$0xff] }
  0x4e   :  { %2047 = vmatpush3.msra.mxu0 %v133_v23  ;;  %2127 = vmatpush3.msra.mxu1 %v413_v24  ;;  %v1236_v10 = vld [vmem:[%s3129_s2 + $0x8] sm:$0xff]  ;;  %v108_v11 = vld [vmem:[%s3127_s0 + $0x58] sm:$0xff]  ;;  %v389_v14 = vld [vmem:[%s3128_s1 + $0x60] sm:$0xff] }
  0x4f   :  { %2048 = vmatprep.subr.mxu0 %v132_v25  ;;  %2128 = vmatprep.subr.mxu1 %v412_v26  ;;  %v388_v12 = vld [vmem:[%s3128_s1 + $0x58] sm:$0xff]  ;;  %v679_v17 = vld [vmem:[#allocation7 + $0xb0] sm:$0xff]  ;;  %v110_v19 = vld [vmem:[%s3127_s0 + $0x68] sm:$0xff] }
  0x50   :  { %2049 = vmatpush3.msra.mxu0 %v132_v25  ;;  %2129 = vmatpush3.msra.mxu1 %v412_v26  ;;  %v680_v15 = vld [vmem:[#allocation7 + $0xb8] sm:$0xff]  ;;  %v968_v18 = vld [vmem:[#allocation8 + $0xb0] sm:$0xff]  ;;  %v390_v20 = vld [vmem:[%s3128_s1 + $0x68] sm:$0xff] }
  0x51   :  { %2050 = vmatprep.subr.mxu0 %v131_v27  ;;  %2130 = vmatprep.subr.mxu1 %v411_v28  ;;  %v969_v16 = vld [vmem:[#allocation8 + $0xb8] sm:$0xff]  ;;  %v111_v21 = vld [vmem:[%s3127_s0 + $0x70] sm:$0xff]  ;;  %v1240_v23 = vld [vmem:[%s3129_s2 + $0x28] sm:$0xff] }
  0x52   :  { %2051 = vmatpush3.msra.mxu0 %v131_v27  ;;  %2131 = vmatpush3.msra.mxu1 %v411_v28  ;;  %v391_v22 = vld [vmem:[%s3128_s1 + $0x70] sm:$0xff]  ;;  %v1239_v24 = vld [vmem:[%s3129_s2 + $0x20] sm:$0xff]  ;;  %v678_v25 = vld [vmem:[#allocation7 + $0xa8] sm:$0xff] }
  0x53   :  { %2052 = vmatprep.subr.mxu0 %v130_v29  ;;  %2132 = vmatprep.subr.mxu1 %v410_v30  ;;  %v967_v26 = vld [vmem:[#allocation8 + $0xa8] sm:$0xff]  ;;  %v112_v27 = vld [vmem:[%s3127_s0 + $0x78] sm:$0xff] }
  0x54   :  { %2053 = vmatpush3.msra.mxu0 %v130_v29  ;;  %2133 = vmatpush3.msra.mxu1 %v410_v30  ;;  %v392_v28 = vld [vmem:[%s3128_s1 + $0x78] sm:$0xff]  ;;  %v113_v29 = vld [vmem:[%s3127_s0 + $0x80] sm:$0xff] }
  0x55   :  { %2054 = vmatprep.subr.mxu0 %v129_v31  ;;  %2134 = vmatprep.subr.mxu1 %v409_v32  ;;  %v393_v30 = vld [vmem:[%s3128_s1 + $0x80] sm:$0xff] }
  0x56   :  { %2055 = vmatpush3.msra.mxu0 %v129_v31  ;;  %2056 = vmatprep.mubr.f32.mxu0 %v97_v33  ;;  %v677_v31 = vld [vmem:[#allocation7 + $0xa0] sm:$0xff]  ;;  %v1242_v33 = vld [vmem:[%s3129_s2 + $0x38] sm:$0xff] }
  0x57   :  { %2135 = vmatpush3.msra.mxu1 %v409_v32  ;;  %2136 = vmatprep.mubr.f32.mxu1 %v377_v34  ;;  %v966_v32 = vld [vmem:[#allocation8 + $0xa0] sm:$0xff]  ;;  %v1241_v34 = vld [vmem:[%s3129_s2 + $0x30] sm:$0xff] }
  0x58   :  { %2057 = vmatmul.mubr.f32.vlgmr.msra.gmra.mxu0 %v98_v35  ;;  %2137 = vmatmul.mubr.f32.vlgmr.msra.gmra.mxu1 %v378_v36  ;;  %v114_v35 = vld [vmem:[%s3127_s0 + $0x88] sm:$0xff] }
  0x59   :  { %2059 = vmatprep.mubr.f32.mxu0 %v99_v37  ;;  %2139 = vmatprep.mubr.f32.mxu1 %v379_v38  ;;  %v394_v36 = vld [vmem:[%s3128_s1 + $0x88] sm:$0xff]  ;;  %v115_v37 = vld [vmem:[%s3127_s0 + $0x90] sm:$0xff] }
  0x5a   :  { %689 = vmatprep.subr.mxu0 %v688_v39  ;;  %978 = vmatprep.subr.mxu1 %v977_v40  ;;  %v395_v38 = vld [vmem:[%s3128_s1 + $0x90] sm:$0xff]  ;;  %v676_v39 = vld [vmem:[#allocation7 + $0x98] sm:$0xff] }
  0x5b   :  { %690 = vmatpush1.msra.mxu0 %v687_v41  ;;  %979 = vmatpush1.msra.mxu1 %v976_v42  ;;  %v965_v40 = vld [vmem:[#allocation8 + $0x98] sm:$0xff]  ;;  %v675_v41 = vld [vmem:[#allocation7 + $0x90] sm:$0xff] }
  0x5c   :  { %2060 = vmatmul.mubr.f32.gmra.mxu0 %v100_v43  ;;  %2140 = vmatmul.mubr.f32.gmra.mxu1 %v380_v44  ;;  %v964_v42 = vld [vmem:[#allocation8 + $0x90] sm:$0xff]  ;;  %v116_v43 = vld [vmem:[%s3127_s0 + $0x98] sm:$0xff] }
  0x5d   :  { %2062 = vmatprep.mubr.f32.mxu0 %v101_v45  ;;  %2142 = vmatprep.mubr.f32.mxu1 %v381_v46  ;;  %v396_v44 = vld [vmem:[%s3128_s1 + $0x98] sm:$0xff]  ;;  %v117_v45 = vld [vmem:[%s3127_s0 + $0xa0] sm:$0xff] }
  0x5e   :  { %691 = vmatprep.subr.mxu0 %v686_v47  ;;  %980 = vmatprep.subr.mxu1 %v975_v48  ;;  %v397_v46 = vld [vmem:[%s3128_s1 + $0xa0] sm:$0xff]  ;;  %v1244_v47 = vld [vmem:[%s3129_s2 + $0x48] sm:$0xff] }
  0x5f   :  { %692 = vmatpush1.msra.mxu0 %v685_v49  ;;  %981 = vmatpush1.msra.mxu1 %v974_v50  ;;  %v1243_v48 = vld [vmem:[%s3129_s2 + $0x40] sm:$0xff]  ;;  %v674_v49 = vld [vmem:[#allocation7 + $0x88] sm:$0xff] }
  0x60   :  { %2063 = vmatmul.mubr.f32.gmra.mxu0 %v102_v51  ;;  %2143 = vmatmul.mubr.f32.gmra.mxu1 %v382_v52  ;;  %v963_v50 = vld [vmem:[#allocation8 + $0x88] sm:$0xff] }
  0x61   :  { %2065 = vmatprep.mubr.f32.mxu0 %v103_v53  ;;  %2145 = vmatprep.mubr.f32.mxu1 %v383_v54  ;;  %v118_v51 = vld [vmem:[%s3127_s0 + $0xa8] sm:$0xff]  ;;  %v119_v53 = vld [vmem:[%s3127_s0 + $0xb0] sm:$0xff] }
  0x62   :  { %693 = vmatprep.subr.mxu0 %v684_v55  ;;  %982 = vmatprep.subr.mxu1 %v973_v56  ;;  %v398_v52 = vld [vmem:[%s3128_s1 + $0xa8] sm:$0xff]  ;;  %v399_v54 = vld [vmem:[%s3128_s1 + $0xb0] sm:$0xff]  ;;  %v673_v55 = vld [vmem:[#allocation7 + $0x80] sm:$0xff] }
  0x63   :  { %694 = vmatpush1.msra.mxu0 %v683_v57  ;;  %983 = vmatpush1.msra.mxu1 %v972_v58  ;;  %v962_v56 = vld [vmem:[#allocation8 + $0x80] sm:$0xff]  ;;  %v1246_v57 = vld [vmem:[%s3129_s2 + $0x58] sm:$0xff]  ;;  %v1245_v58 = vld [vmem:[%s3129_s2 + $0x50] sm:$0xff] }
  0x64   :  { %2066 = vmatmul.mubr.f32.gmra.mxu0 %v104_v59  ;;  %2146 = vmatmul.mubr.f32.gmra.mxu1 %v384_v60  ;;  %v120_v59 = vld [vmem:[%s3127_s0 + $0xb8] sm:$0xff] }
  0x65   :  { %2068 = vmatprep.mubr.f32.mxu0 %v105_v61  ;;  %2148 = vmatprep.mubr.f32.mxu1 %v385_v62  ;;  %v400_v60 = vld [vmem:[%s3128_s1 + $0xb8] sm:$0xff]  ;;  %v121_v61 = vld [vmem:[%s3127_s0 + $0xc0] sm:$0xff] }
  0x66   :  { %1279 = vperm.xlu1 %2197, %v1237_v63   ;;  %1269 = vperm.xlu0 %2196, %v1235_v0   ;;  %v401_v62 = vld [vmem:[%s3128_s1 + $0xc0] sm:$0xff]  ;;  %v672_v63 = vld [vmem:[#allocation7 + $0x78] sm:$0xff] }
  0x67   :  { %695 = vmatprep.subr.mxu0 %v682_v1  ;;  %984 = vmatprep.subr.mxu1 %v971_v2  ;;  %v961_v0 = vld [vmem:[#allocation8 + $0x78] sm:$0xff]  ;;  %v671_v1 = vld [vmem:[#allocation7 + $0x70] sm:$0xff] }
  0x68   :  { %2069 = vmatmul.mubr.f32.gmra.mxu0 %v106_v3  ;;  %2149 = vmatmul.mubr.f32.gmra.mxu1 %v386_v4  ;;  %v960_v2 = vld [vmem:[#allocation8 + $0x70] sm:$0xff]  ;;  %v122_v3 = vld [vmem:[%s3127_s0 + $0xc8] sm:$0xff] }
  0x69   :  { %2071 = vmatprep.mubr.f32.mxu0 %v107_v5  ;;  %2151 = vmatprep.mubr.f32.mxu1 %v387_v6  ;;  %v402_v4 = vld [vmem:[%s3128_s1 + $0xc8] sm:$0xff]  ;;  %v123_v5 = vld [vmem:[%s3127_s0 + $0xd0] sm:$0xff] }
  0x6a   :  { %696 = vmatpush1.msra.mxu0 %v681_v7  ;;  %985 = vmatpush1.msra.mxu1 %v970_v8  ;;  %v403_v6 = vld [vmem:[%s3128_s1 + $0xd0] sm:$0xff]  ;;  %v1248_v7 = vld [vmem:[%s3129_s2 + $0x68] sm:$0xff]  ;;  %v1247_v8 = vld [vmem:[%s3129_s2 + $0x60] sm:$0xff] }
  0x6b   :  { %1284 = vperm.xlu1 %2197, %v1238_v9   ;;  %1274 = vperm.xlu0 %2196, %v1236_v10   ;;  %v670_v9 = vld [vmem:[#allocation7 + $0x68] sm:$0xff] }
  0x6c   :  { %2072 = vmatmul.mubr.f32.gmra.mxu0 %v108_v11  ;;  %2152 = vmatmul.mubr.f32.gmra.mxu1 %v388_v12  ;;  %v959_v10 = vld [vmem:[#allocation8 + $0x68] sm:$0xff]  ;;  %v124_v11 = vld [vmem:[%s3127_s0 + $0xd8] sm:$0xff] }
  0x6d   :  { %2074 = vmatprep.mubr.f32.mxu0 %v109_v13  ;;  %2154 = vmatprep.mubr.f32.mxu1 %v389_v14  ;;  %v404_v12 = vld [vmem:[%s3128_s1 + $0xd8] sm:$0xff]  ;;  %v125_v13 = vld [vmem:[%s3127_s0 + $0xe0] sm:$0xff] }
  0x6e   :  { %697 = vmatprep.subr.mxu0 %v680_v15  ;;  %986 = vmatprep.subr.mxu1 %v969_v16  ;;  %v405_v14 = vld [vmem:[%s3128_s1 + $0xe0] sm:$0xff] }
  0x6f   :  { %698 = vmatpush1.msra.mxu0 %v679_v17  ;;  %987 = vmatpush1.msra.mxu1 %v968_v18  ;;  %v669_v15 = vld [vmem:[#allocation7 + $0x60] sm:$0xff]  ;;  %v1250_v17 = vld [vmem:[%s3129_s2 + $0x78] sm:$0xff]  ;;  %v1249_v18 = vld [vmem:[%s3129_s2 + $0x70] sm:$0xff] }
  0x70   :  { %2075 = vmatmul.mubr.f32.gmra.mxu0 %v110_v19  ;;  %2155 = vmatmul.mubr.f32.gmra.mxu1 %v390_v20  ;;  %v958_v16 = vld [vmem:[#allocation8 + $0x60] sm:$0xff]  ;;  %v126_v19 = vld [vmem:[%s3127_s0 + $0xe8] sm:$0xff] }
  0x71   :  { %2077 = vmatprep.mubr.f32.mxu0 %v111_v21  ;;  %2157 = vmatprep.mubr.f32.mxu1 %v391_v22  ;;  %v406_v20 = vld [vmem:[%s3128_s1 + $0xe8] sm:$0xff]  ;;  %v127_v21 = vld [vmem:[%s3127_s0 + $0xf0] sm:$0xff] }
  0x72   :  { %1294 = vperm.xlu1 %2197, %v1240_v23   ;;  %1289 = vperm.xlu0 %2196, %v1239_v24   ;;  %v407_v22 = vld [vmem:[%s3128_s1 + $0xf0] sm:$0xff]  ;;  %v668_v23 = vld [vmem:[#allocation7 + $0x58] sm:$0xff] }
  0x73   :  { %699 = vmatprep.subr.mxu0 %v678_v25  ;;  %988 = vmatprep.subr.mxu1 %v967_v26  ;;  %v957_v24 = vld [vmem:[#allocation8 + $0x58] sm:$0xff]  ;;  %v667_v25 = vld [vmem:[#allocation7 + $0x50] sm:$0xff] }
  0x74   :  { %2078 = vmatmul.mubr.f32.gmra.mxu0 %v112_v27  ;;  %2158 = vmatmul.mubr.f32.gmra.mxu1 %v392_v28  ;;  %v956_v26 = vld [vmem:[#allocation8 + $0x50] sm:$0xff]  ;;  %v128_v27 = vld [vmem:[%s3127_s0 + $0xf8] sm:$0xff] }
  0x75   :  { %2080 = vmatprep.mubr.f32.mxu0 %v113_v29  ;;  %2160 = vmatprep.mubr.f32.mxu1 %v393_v30  ;;  %v408_v28 = vld [vmem:[%s3128_s1 + $0xf8] sm:$0xff]  ;;  %v1252_v29 = vld [vmem:[%s3129_s2 + $0x88] sm:$0xff]  ;;  %v1251_v30 = vld [vmem:[%s3129_s2 + $0x80] sm:$0xff] }
  0x76   :  { %700 = vmatpush1.msra.mxu0 %v677_v31  ;;  %989 = vmatpush1.msra.mxu1 %v966_v32  ;;  %v666_v31 = vld [vmem:[#allocation7 + $0x48] sm:$0xff] }
  0x77   :  { %1304 = vperm.xlu1 %2197, %v1242_v33   ;;  %1299 = vperm.xlu0 %2196, %v1241_v34   ;;  %v955_v32 = vld [vmem:[#allocation8 + $0x48] sm:$0xff]  ;;  %v665_v33 = vld [vmem:[#allocation7 + $0x40] sm:$0xff] }
  0x78   :  { %2081 = vmatmul.mubr.f32.gmra.mxu0 %v114_v35  ;;  %2161 = vmatmul.mubr.f32.gmra.mxu1 %v394_v36  ;;  %v954_v34 = vld [vmem:[#allocation8 + $0x40] sm:$0xff]  ;;  %v664_v35 = vld [vmem:[#allocation7 + $0x38] sm:$0xff] }
  0x79   :  { %2083 = vmatprep.mubr.f32.mxu0 %v115_v37  ;;  %2163 = vmatprep.mubr.f32.mxu1 %v395_v38  ;;  %v953_v36 = vld [vmem:[#allocation8 + $0x38] sm:$0xff]  ;;  %v1253_v38 = vld [vmem:[%s3129_s2 + $0x90] sm:$0xff] }
  0x7a   :  { %701 = vmatprep.subr.mxu0 %v676_v39  ;;  %990 = vmatprep.subr.mxu1 %v965_v40  ;;  %v1254_v37 = vld [vmem:[%s3129_s2 + $0x98] sm:$0xff]  ;;  %v663_v39 = vld [vmem:[#allocation7 + $0x30] sm:$0xff] }
  0x7b   :  { %702 = vmatpush1.msra.mxu0 %v675_v41  ;;  %991 = vmatpush1.msra.mxu1 %v964_v42  ;;  %v952_v40 = vld [vmem:[#allocation8 + $0x30] sm:$0xff]  ;;  %v662_v41 = vld [vmem:[#allocation7 + $0x28] sm:$0xff] }
  0x7c   :  { %2084 = vmatmul.mubr.f32.gmra.mxu0 %v116_v43  ;;  %2164 = vmatmul.mubr.f32.gmra.mxu1 %v396_v44  ;;  %v951_v42 = vld [vmem:[#allocation8 + $0x28] sm:$0xff]  ;;  %v661_v43 = vld [vmem:[#allocation7 + $0x20] sm:$0xff] }
  0x7d   :  { %2086 = vmatprep.mubr.f32.mxu0 %v117_v45  ;;  %2166 = vmatprep.mubr.f32.mxu1 %v397_v46  ;;  %v950_v44 = vld [vmem:[#allocation8 + $0x20] sm:$0xff]  ;;  %v1256_v45 = vld [vmem:[%s3129_s2 + $0xa8] sm:$0xff] }
  0x7e   :  { %1314 = vperm.xlu1 %2197, %v1244_v47   ;;  %1309 = vperm.xlu0 %2196, %v1243_v48   ;;  %v1255_v46 = vld [vmem:[%s3129_s2 + $0xa0] sm:$0xff]  ;;  %v660_v47 = vld [vmem:[#allocation7 + $0x18] sm:$0xff] }
  0x7f   :  { %703 = vmatprep.subr.mxu0 %v674_v49  ;;  %992 = vmatprep.subr.mxu1 %v963_v50  ;;  %v949_v48 = vld [vmem:[#allocation8 + $0x18] sm:$0xff]  ;;  %v659_v49 = vld [vmem:[#allocation7 + $0x10] sm:$0xff] }
  0x80   :  { %2087 = vmatmul.mubr.f32.gmra.mxu0 %v118_v51  ;;  %2167 = vmatmul.mubr.f32.gmra.mxu1 %v398_v52  ;;  %v948_v50 = vld [vmem:[#allocation8 + $0x10] sm:$0xff]  ;;  %v658_v51 = vld [vmem:[#allocation7 + $0x8] sm:$0xff] }
  0x81   :  { %2089 = vmatprep.mubr.f32.mxu0 %v119_v53  ;;  %2169 = vmatprep.mubr.f32.mxu1 %v399_v54  ;;  %v947_v52 = vld [vmem:[#allocation8 + $0x8] sm:$0xff]  ;;  %v1258_v53 = vld [vmem:[%s3129_s2 + $0xb8] sm:$0xff]  ;;  %v1257_v54 = vld [vmem:[%s3129_s2 + $0xb0] sm:$0xff] }
  0x82   :  { %704 = vmatpush1.msra.mxu0 %v673_v55  ;;  %993 = vmatpush1.msra.mxu1 %v962_v56  ;;  %v657_v55 = vld [vmem:[#allocation7] sm:$0xff] }
  0x83   :  { %1324 = vperm.xlu1 %2197, %v1246_v57   ;;  %1319 = vperm.xlu0 %2196, %v1245_v58   ;;  %v946_v56 = vld [vmem:[#allocation8] sm:$0xff]  ;;  %v1260_v57 = vld [vmem:[%s3129_s2 + $0xc8] sm:$0xff] }
  0x84   :  { %2090 = vmatmul.mubr.f32.gmra.mxu0 %v120_v59  ;;  %2170 = vmatmul.mubr.f32.gmra.mxu1 %v400_v60  ;;  %v1259_v58 = vld [vmem:[%s3129_s2 + $0xc0] sm:$0xff]  ;;  %v2337_v59 = vmov 0.0   ;;  %v1262_v60 = vld [vmem:[%s3129_s2 + $0xd8] sm:$0xff] }
  0x85   :  { %2092 = vmatprep.mubr.f32.mxu0 %v121_v61  ;;  %2172 = vmatprep.mubr.f32.mxu1 %v401_v62  ;;  %v1261_v61 = vld [vmem:[%s3129_s2 + $0xd0] sm:$0xff]  ;;  %v1264_v62 = vld [vmem:[%s3129_s2 + $0xe8] sm:$0xff] }
  0x86   :  { %705 = vmatprep.subr.mxu0 %v672_v63  ;;  %994 = vmatprep.subr.mxu1 %v961_v0  ;;  %v1263_v63 = vld [vmem:[%s3129_s2 + $0xe0] sm:$0xff]  ;;  %v1266_v0 = vld [vmem:[%s3129_s2 + $0xf8] sm:$0xff] }
  0x87   :  { %706 = vmatpush1.msra.mxu0 %v671_v1  ;;  %995 = vmatpush1.msra.mxu1 %v960_v2  ;;  %v1265_v1 = vld [vmem:[%s3129_s2 + $0xf0] sm:$0xff]  ;;  %v1492_v2 = vld [vmem:[%s3130_s3 + $0x8] sm:$0xff] }
  0x88   :  { %2093 = vmatmul.mubr.f32.gmra.mxu0 %v122_v3  ;;  %2173 = vmatmul.mubr.f32.gmra.mxu1 %v402_v4  ;;  %v1491_v3 = vld [vmem:[%s3130_s3] sm:$0xff]  ;;  %v1494_v4 = vld [vmem:[%s3130_s3 + $0x18] sm:$0xff] }
  0x89   :  { %2095 = vmatprep.mubr.f32.mxu0 %v123_v5  ;;  %2175 = vmatprep.mubr.f32.mxu1 %v403_v6  ;;  %v1493_v5 = vld [vmem:[%s3130_s3 + $0x10] sm:$0xff]  ;;  %v1496_v6 = vld [vmem:[%s3130_s3 + $0x28] sm:$0xff] }
  0x8a   :  { %1334 = vperm.xlu1 %2197, %v1248_v7   ;;  %1329 = vperm.xlu0 %2196, %v1247_v8   ;;  %v1495_v7 = vld [vmem:[%s3130_s3 + $0x20] sm:$0xff]  ;;  %v1498_v8 = vld [vmem:[%s3130_s3 + $0x38] sm:$0xff] }
  0x8b   :  { %707 = vmatprep.subr.mxu0 %v670_v9  ;;  %996 = vmatprep.subr.mxu1 %v959_v10  ;;  %v1497_v9 = vld [vmem:[%s3130_s3 + $0x30] sm:$0xff]  ;;  %v1500_v10 = vld [vmem:[%s3130_s3 + $0x48] sm:$0xff] }
  0x8c   :  { %2096 = vmatmul.mubr.f32.gmra.mxu0 %v124_v11  ;;  %2176 = vmatmul.mubr.f32.gmra.mxu1 %v404_v12  ;;  %v1499_v11 = vld [vmem:[%s3130_s3 + $0x40] sm:$0xff]  ;;  %v1502_v12 = vld [vmem:[%s3130_s3 + $0x58] sm:$0xff] }
  0x8d   :  { %2098 = vmatprep.mubr.f32.mxu0 %v125_v13  ;;  %2178 = vmatprep.mubr.f32.mxu1 %v405_v14  ;;  %v1501_v13 = vld [vmem:[%s3130_s3 + $0x50] sm:$0xff]  ;;  %v1504_v14 = vld [vmem:[%s3130_s3 + $0x68] sm:$0xff] }
  0x8e   :  { %708 = vmatpush1.msra.mxu0 %v669_v15  ;;  %997 = vmatpush1.msra.mxu1 %v958_v16  ;;  %v1503_v15 = vld [vmem:[%s3130_s3 + $0x60] sm:$0xff]  ;;  %v1506_v16 = vld [vmem:[%s3130_s3 + $0x78] sm:$0xff] }
  0x8f   :  { %1344 = vperm.xlu1 %2197, %v1250_v17   ;;  %1339 = vperm.xlu0 %2196, %v1249_v18   ;;  %v1505_v17 = vld [vmem:[%s3130_s3 + $0x70] sm:$0xff]  ;;  %v1508_v18 = vld [vmem:[%s3130_s3 + $0x88] sm:$0xff] }
  0x90   :  { %2099 = vmatmul.mubr.f32.gmra.mxu0 %v126_v19  ;;  %2179 = vmatmul.mubr.f32.gmra.mxu1 %v406_v20  ;;  %v1507_v19 = vld [vmem:[%s3130_s3 + $0x80] sm:$0xff]  ;;  %v1510_v20 = vld [vmem:[%s3130_s3 + $0x98] sm:$0xff] }
  0x91   :  { %2101 = vmatprep.mubr.f32.mxu0 %v127_v21  ;;  %2181 = vmatprep.mubr.f32.mxu1 %v407_v22  ;;  %v1509_v21 = vld [vmem:[%s3130_s3 + $0x90] sm:$0xff]  ;;  %v1512_v22 = vld [vmem:[%s3130_s3 + $0xa8] sm:$0xff] }
  0x92   :  { %709 = vmatprep.subr.mxu0 %v668_v23  ;;  %998 = vmatprep.subr.mxu1 %v957_v24  ;;  %v1511_v23 = vld [vmem:[%s3130_s3 + $0xa0] sm:$0xff]  ;;  %v1514_v24 = vld [vmem:[%s3130_s3 + $0xb8] sm:$0xff] }
  0x93   :  { %710 = vmatpush1.msra.mxu0 %v667_v25  ;;  %999 = vmatpush1.msra.mxu1 %v956_v26  ;;  %v1513_v25 = vld [vmem:[%s3130_s3 + $0xb0] sm:$0xff]  ;;  %v1516_v26 = vld [vmem:[%s3130_s3 + $0xc8] sm:$0xff] }
  0x94   :  { %2102 = vmatmul.mubr.f32.gmra.mxu0 %v128_v27  ;;  %2182 = vmatmul.mubr.f32.gmra.mxu1 %v408_v28  ;;  %v1515_v27 = vld [vmem:[%s3130_s3 + $0xc0] sm:$0xff]  ;;  %v1518_v28 = vld [vmem:[%s3130_s3 + $0xd8] sm:$0xff] }
  0x95   :  { %1354 = vperm.xlu1 %2197, %v1252_v29   ;;  %1349 = vperm.xlu0 %2196, %v1251_v30   ;;  %v1517_v29 = vld [vmem:[%s3130_s3 + $0xd0] sm:$0xff]  ;;  %v1520_v30 = vld [vmem:[%s3130_s3 + $0xe8] sm:$0xff] }
  0x96   :  { %711 = vmatprep.subr.mxu0 %v666_v31  ;;  %1000 = vmatprep.subr.mxu1 %v955_v32  ;;  %v1519_v31 = vld [vmem:[%s3130_s3 + $0xe0] sm:$0xff]  ;;  %v1522_v32 = vld [vmem:[%s3130_s3 + $0xf8] sm:$0xff] }
  0x97   :  { %712 = vmatpush1.msra.mxu0 %v665_v33  ;;  %1001 = vmatpush1.msra.mxu1 %v954_v34  ;;  %v1521_v33 = vld [vmem:[%s3130_s3 + $0xf0] sm:$0xff] }
  0x98   :  { %713 = vmatprep.subr.mxu0 %v664_v35  ;;  %1002 = vmatprep.subr.mxu1 %v953_v36  ;;  %v2812_v36 = vld [vmem:[%s3132_s5] ss:$0 sm:$0xff] }
  0x99   :  { %1364 = vperm.xlu1 %2197, %v1254_v37   ;;  %1359 = vperm.xlu0 %2196, %v1253_v38   ;;  %v2817_v37 = vld [vmem:[%s3134_s7] ss:$0 sm:$0xff] }
  0x9a   :  { %714 = vmatpush1.msra.mxu0 %v663_v39  ;;  %1003 = vmatpush1.msra.mxu1 %v952_v40 }
  0x9b   :  { %715 = vmatprep.subr.mxu0 %v662_v41  ;;  %1004 = vmatprep.subr.mxu1 %v951_v42 }
  0x9c   :  { %716 = vmatpush1.msra.mxu0 %v661_v43  ;;  %1005 = vmatpush1.msra.mxu1 %v950_v44 }
  0x9d   :  { %1374 = vperm.xlu1 %2197, %v1256_v45   ;;  %1369 = vperm.xlu0 %2196, %v1255_v46  }
  0x9e   :  { %717 = vmatprep.subr.mxu0 %v660_v47  ;;  %1006 = vmatprep.subr.mxu1 %v949_v48 }
  0x9f   :  { %718 = vmatpush1.msra.mxu0 %v659_v49  ;;  %1007 = vmatpush1.msra.mxu1 %v948_v50 }
  0xa0   :  { %719 = vmatprep.subr.mxu0 %v658_v51  ;;  %1008 = vmatprep.subr.mxu1 %v947_v52 }
  0xa1   :  { %1384 = vperm.xlu1 %2197, %v1258_v53   ;;  %1379 = vperm.xlu0 %2196, %v1257_v54  }
  0xa2   :  { %720 = vmatpush1.msra.mxu0 %v657_v55  ;;  %1009 = vmatpush1.msra.mxu1 %v946_v56 }
  0xa3   :  { %753 = vmatprep.mubr.f32.mxu0 %v2337_v59  ;;  %1042 = vmatprep.mubr.f32.mxu1 %v2337_v59 }
  0xa5   :  { %1394 = vperm.xlu1 %2197, %v1260_v57   ;;  %1389 = vperm.xlu0 %2196, %v1259_v58  }
  0xa9   :  { %1404 = vperm.xlu1 %2197, %v1262_v60   ;;  %1399 = vperm.xlu0 %2196, %v1261_v61  }
  0xad   :  { %1414 = vperm.xlu1 %2197, %v1264_v62   ;;  %1409 = vperm.xlu0 %2196, %v1263_v63  }
  0xb1   :  { %1424 = vperm.xlu1 %2197, %v1266_v0   ;;  %1419 = vperm.xlu0 %2196, %v1265_v1  }
  0xb5   :  { %1530 = vperm.xlu1 %2197, %v1492_v2   ;;  %1525 = vperm.xlu0 %2196, %v1491_v3  }
  0xb9   :  { %1540 = vperm.xlu1 %2197, %v1494_v4   ;;  %1535 = vperm.xlu0 %2196, %v1493_v5  }
  0xbd   :  { %1550 = vperm.xlu1 %2197, %v1496_v6   ;;  %1545 = vperm.xlu0 %2196, %v1495_v7  }
  0xc1   :  { %1560 = vperm.xlu1 %2197, %v1498_v8   ;;  %1555 = vperm.xlu0 %2196, %v1497_v9  }
  0xc5   :  { %1570 = vperm.xlu1 %2197, %v1500_v10   ;;  %1565 = vperm.xlu0 %2196, %v1499_v11  }
  0xc9   :  { %1580 = vperm.xlu1 %2197, %v1502_v12   ;;  %1575 = vperm.xlu0 %2196, %v1501_v13  }
  0xcd   :  { %1590 = vperm.xlu1 %2197, %v1504_v14   ;;  %1585 = vperm.xlu0 %2196, %v1503_v15  }
  0xd1   :  { %1600 = vperm.xlu1 %2197, %v1506_v16   ;;  %1595 = vperm.xlu0 %2196, %v1505_v17  }
  0xd5   :  { %1610 = vperm.xlu1 %2197, %v1508_v18   ;;  %1605 = vperm.xlu0 %2196, %v1507_v19  }
  0xd9   :  { %1620 = vperm.xlu1 %2197, %v1510_v20   ;;  %1615 = vperm.xlu0 %2196, %v1509_v21  }
  0xdd   :  { %1630 = vperm.xlu1 %2197, %v1512_v22   ;;  %1625 = vperm.xlu0 %2196, %v1511_v23  }
  0xe1   :  { %1640 = vperm.xlu1 %2197, %v1514_v24   ;;  %1635 = vperm.xlu0 %2196, %v1513_v25  }
  0xe5   :  { %1650 = vperm.xlu1 %2197, %v1516_v26   ;;  %1645 = vperm.xlu0 %2196, %v1515_v27  }
  0xe9   :  { %1660 = vperm.xlu1 %2197, %v1518_v28   ;;  %1655 = vperm.xlu0 %2196, %v1517_v29  }
  0xed   :  { %1670 = vperm.xlu1 %2197, %v1520_v30   ;;  %1665 = vperm.xlu0 %2196, %v1519_v31  }
  0xf1   :  { %1680 = vperm.xlu1 %2197, %v1522_v32   ;;  %1675 = vperm.xlu0 %2196, %v1521_v33  }
 0x118   :  { %v2058_v34 = vpop.f32.mrf.mxu0  ;;  %v2138_v35 = vpop.f32.mrf.mxu1 }
 0x119   :  { %v224_v44 = vadd.f32 %v2058_v34, %v2812_v36  ;;  %v504_v45 = vadd.f32 %v2138_v35, %v2817_v37 }
 0x11a   :  { %v218_v38 = vpop.f32.mrf.mxu0  ;;  %v498_v39 = vpop.f32.mrf.mxu1 }
 0x11b   :  { %v219_v40 = vadd.f32 %v2812_v36, %v218_v38  ;;  %v499_v41 = vadd.f32 %v2817_v37, %v498_v39 }
 0x11c   :  { %v2061_v42 = vpop.f32.mrf.mxu0  ;;  %v2141_v43 = vpop.f32.mrf.mxu1 }
 0x11d   :  { %754 = vmatmul.mubr.f32.vlgmr.msra.gmra.mxu0 %v219_v40  ;;  %1043 = vmatmul.mubr.f32.vlgmr.msra.gmra.mxu1 %v499_v41  ;;  %v234_v52 = vadd.f32 %v2061_v42, %v2812_v36  ;;  %v514_v53 = vadd.f32 %v2141_v43, %v2817_v37 }
 0x11e   :  { %759 = vmatprep.mubr.f32.mxu0 %v2337_v59  ;;  %1048 = vmatprep.mubr.f32.mxu1 %v2337_v59  ;;  %v228_v46 = vpop.f32.mrf.mxu0  ;;  %v508_v47 = vpop.f32.mrf.mxu1 }
 0x11f   :  { %v229_v48 = vadd.f32 %v2812_v36, %v228_v46  ;;  %v509_v49 = vadd.f32 %v2817_v37, %v508_v47 }
 0x120   :  { %v2064_v50 = vpop.f32.mrf.mxu0  ;;  %v2144_v51 = vpop.f32.mrf.mxu1 }
 0x121   :  { %760 = vmatmul.mubr.f32.gmra.mxu0 %v224_v44  ;;  %1049 = vmatmul.mubr.f32.gmra.mxu1 %v504_v45  ;;  %v244_v61 = vadd.f32 %v2064_v50, %v2812_v36  ;;  %v524_v62 = vadd.f32 %v2144_v51, %v2817_v37 }
 0x122   :  { %765 = vmatprep.mubr.f32.mxu0 %v2337_v59  ;;  %1054 = vmatprep.mubr.f32.mxu1 %v2337_v59  ;;  %v238_v54 = vpop.f32.mrf.mxu0  ;;  %v518_v55 = vpop.f32.mrf.mxu1 }
 0x123   :  { %v239_v56 = vadd.f32 %v2812_v36, %v238_v54  ;;  %v519_v57 = vadd.f32 %v2817_v37, %v518_v55 }
 0x124   :  { %v2067_v58 = vpop.f32.mrf.mxu0  ;;  %v2147_v60 = vpop.f32.mrf.mxu1 }
 0x125   :  { %766 = vmatmul.mubr.f32.gmra.mxu0 %v229_v48  ;;  %1055 = vmatmul.mubr.f32.gmra.mxu1 %v509_v49  ;;  %v254_v5 = vadd.f32 %v2067_v58, %v2812_v36  ;;  %v534_v6 = vadd.f32 %v2147_v60, %v2817_v37 }
 0x126   :  { %771 = vmatprep.mubr.f32.mxu0 %v2337_v59  ;;  %1060 = vmatprep.mubr.f32.mxu1 %v2337_v59  ;;  %v248_v63 = vpop.f32.mrf.mxu0  ;;  %v528_v0 = vpop.f32.mrf.mxu1 }
 0x127   :  { %v249_v1 = vadd.f32 %v2812_v36, %v248_v63  ;;  %v529_v2 = vadd.f32 %v2817_v37, %v528_v0 }
 0x128   :  { %v2070_v3 = vpop.f32.mrf.mxu0  ;;  %v2150_v4 = vpop.f32.mrf.mxu1 }
 0x129   :  { %772 = vmatmul.mubr.f32.gmra.mxu0 %v234_v52  ;;  %1061 = vmatmul.mubr.f32.gmra.mxu1 %v514_v53  ;;  %v264_v13 = vadd.f32 %v2070_v3, %v2812_v36  ;;  %v544_v14 = vadd.f32 %v2150_v4, %v2817_v37 }
 0x12a   :  { %777 = vmatprep.mubr.f32.mxu0 %v2337_v59  ;;  %1066 = vmatprep.mubr.f32.mxu1 %v2337_v59  ;;  %v258_v7 = vpop.f32.mrf.mxu0  ;;  %v538_v8 = vpop.f32.mrf.mxu1 }
 0x12b   :  { %v259_v9 = vadd.f32 %v2812_v36, %v258_v7  ;;  %v539_v10 = vadd.f32 %v2817_v37, %v538_v8 }
 0x12c   :  { %v2073_v11 = vpop.f32.mrf.mxu0  ;;  %v2153_v12 = vpop.f32.mrf.mxu1 }
 0x12d   :  { %778 = vmatmul.mubr.f32.gmra.mxu0 %v239_v56  ;;  %1067 = vmatmul.mubr.f32.gmra.mxu1 %v519_v57  ;;  %v274_v21 = vadd.f32 %v2073_v11, %v2812_v36  ;;  %v554_v22 = vadd.f32 %v2153_v12, %v2817_v37  ;;  %v2915_v12 = vpop.permute.xlu0 %1269 }
 0x12e   :  { %783 = vmatprep.mubr.f32.mxu0 %v2337_v59  ;;  %1072 = vmatprep.mubr.f32.mxu1 %v2337_v59  ;;  %v268_v15 = vpop.f32.mrf.mxu0  ;;  %v548_v16 = vpop.f32.mrf.mxu1 }
 0x12f   :  { %v269_v17 = vadd.f32 %v2812_v36, %v268_v15  ;;  %v549_v18 = vadd.f32 %v2817_v37, %v548_v16 }
 0x130   :  { %v2076_v19 = vpop.f32.mrf.mxu0  ;;  %v2156_v20 = vpop.f32.mrf.mxu1 }
 0x131   :  { %784 = vmatmul.mubr.f32.gmra.mxu0 %v244_v61  ;;  %1073 = vmatmul.mubr.f32.gmra.mxu1 %v524_v62  ;;  %v284_v29 = vadd.f32 %v2076_v19, %v2812_v36  ;;  %v564_v30 = vadd.f32 %v2156_v20, %v2817_v37 }
 0x132   :  { %789 = vmatprep.mubr.f32.mxu0 %v2337_v59  ;;  %1078 = vmatprep.mubr.f32.mxu1 %v2337_v59  ;;  %v278_v23 = vpop.f32.mrf.mxu0  ;;  %v558_v24 = vpop.f32.mrf.mxu1 }
 0x133   :  { %v279_v25 = vadd.f32 %v2812_v36, %v278_v23  ;;  %v559_v26 = vadd.f32 %v2817_v37, %v558_v24 }
 0x134   :  { %v2079_v27 = vpop.f32.mrf.mxu0  ;;  %v2159_v28 = vpop.f32.mrf.mxu1 }
 0x135   :  { %790 = vmatmul.mubr.f32.gmra.mxu0 %v249_v1  ;;  %1079 = vmatmul.mubr.f32.gmra.mxu1 %v529_v2  ;;  %v294_v39 = vadd.f32 %v2079_v27, %v2812_v36  ;;  %v574_v40 = vadd.f32 %v2159_v28, %v2817_v37 }
 0x136   :  { %795 = vmatprep.mubr.f32.mxu0 %v2337_v59  ;;  %1084 = vmatprep.mubr.f32.mxu1 %v2337_v59  ;;  %v288_v31 = vpop.f32.mrf.mxu0  ;;  %v568_v32 = vpop.f32.mrf.mxu1 }
 0x137   :  { %v289_v33 = vadd.f32 %v2812_v36, %v288_v31  ;;  %v569_v34 = vadd.f32 %v2817_v37, %v568_v32 }
 0x138   :  { %v2082_v35 = vpop.f32.mrf.mxu0  ;;  %v2162_v38 = vpop.f32.mrf.mxu1 }
 0x139   :  { %796 = vmatmul.mubr.f32.gmra.mxu0 %v254_v5  ;;  %1085 = vmatmul.mubr.f32.gmra.mxu1 %v534_v6  ;;  %v304_v47 = vadd.f32 %v2082_v35, %v2812_v36  ;;  %v584_v48 = vadd.f32 %v2162_v38, %v2817_v37 }
 0x13a   :  { %801 = vmatprep.mubr.f32.mxu0 %v2337_v59  ;;  %1090 = vmatprep.mubr.f32.mxu1 %v2337_v59  ;;  %v298_v41 = vpop.f32.mrf.mxu0  ;;  %v578_v42 = vpop.f32.mrf.mxu1 }
 0x13b   :  { %v299_v43 = vadd.f32 %v2812_v36, %v298_v41  ;;  %v579_v44 = vadd.f32 %v2817_v37, %v578_v42 }
 0x13c   :  { %v2085_v45 = vpop.f32.mrf.mxu0  ;;  %v2165_v46 = vpop.f32.mrf.mxu1 }
 0x13d   :  { %802 = vmatmul.mubr.f32.gmra.mxu0 %v259_v9  ;;  %1091 = vmatmul.mubr.f32.gmra.mxu1 %v539_v10  ;;  %v314_v55 = vadd.f32 %v2085_v45, %v2812_v36  ;;  %v594_v56 = vadd.f32 %v2165_v46, %v2817_v37 }
 0x13e   :  { %807 = vmatprep.mubr.f32.mxu0 %v2337_v59  ;;  %1096 = vmatprep.mubr.f32.mxu1 %v2337_v59  ;;  %v308_v49 = vpop.f32.mrf.mxu0  ;;  %v588_v50 = vpop.f32.mrf.mxu1 }
 0x13f   :  { %v309_v51 = vadd.f32 %v2812_v36, %v308_v49  ;;  %v589_v52 = vadd.f32 %v2817_v37, %v588_v50 }
 0x140   :  { %v2088_v53 = vpop.f32.mrf.mxu0  ;;  %v2168_v54 = vpop.f32.mrf.mxu1 }
 0x141   :  { %808 = vmatmul.mubr.f32.gmra.mxu0 %v264_v13  ;;  %1097 = vmatmul.mubr.f32.gmra.mxu1 %v544_v14  ;;  %v324_v0 = vadd.f32 %v2088_v53, %v2812_v36  ;;  %v604_v1 = vadd.f32 %v2168_v54, %v2817_v37 }
 0x142   :  { %813 = vmatprep.mubr.f32.mxu0 %v2337_v59  ;;  %1102 = vmatprep.mubr.f32.mxu1 %v2337_v59  ;;  %v318_v57 = vpop.f32.mrf.mxu0  ;;  %v598_v58 = vpop.f32.mrf.mxu1 }
 0x143   :  { %v319_v60 = vadd.f32 %v2812_v36, %v318_v57  ;;  %v599_v61 = vadd.f32 %v2817_v37, %v598_v58 }
 0x144   :  { %v2091_v62 = vpop.f32.mrf.mxu0  ;;  %v2171_v63 = vpop.f32.mrf.mxu1 }
 0x145   :  { %814 = vmatmul.mubr.f32.gmra.mxu0 %v269_v17  ;;  %1103 = vmatmul.mubr.f32.gmra.mxu1 %v549_v18  ;;  %v334_v8 = vadd.f32 %v2091_v62, %v2812_v36  ;;  %v614_v9 = vadd.f32 %v2171_v63, %v2817_v37  ;;  %v2921_v17 = vpop.permute.xlu1 %1279 }
 0x146   :  { %819 = vmatprep.mubr.f32.mxu0 %v2337_v59  ;;  %1108 = vmatprep.mubr.f32.mxu1 %v2337_v59  ;;  %v328_v2 = vpop.f32.mrf.mxu0  ;;  %v608_v3 = vpop.f32.mrf.mxu1 }
 0x147   :  { %v329_v4 = vadd.f32 %v2812_v36, %v328_v2  ;;  %v609_v5 = vadd.f32 %v2817_v37, %v608_v3 }
 0x148   :  { %v2094_v6 = vpop.f32.mrf.mxu0  ;;  %v2174_v7 = vpop.f32.mrf.mxu1 }
 0x149   :  { %820 = vmatmul.mubr.f32.gmra.mxu0 %v274_v21  ;;  %1109 = vmatmul.mubr.f32.gmra.mxu1 %v554_v22  ;;  %v344_v18 = vadd.f32 %v2094_v6, %v2812_v36  ;;  %v624_v19 = vadd.f32 %v2174_v7, %v2817_v37  ;;  %v2925_v22 = vpop.permute.xlu0 %1274  ;;  %v2931_v27 = vpop.permute.xlu1 %1284 }
 0x14a   :  { %825 = vmatprep.mubr.f32.mxu0 %v2337_v59  ;;  %1114 = vmatprep.mubr.f32.mxu1 %v2337_v59  ;;  %v338_v10 = vpop.f32.mrf.mxu0  ;;  %v618_v11 = vpop.f32.mrf.mxu1 }
 0x14b   :  { %v339_v13 = vadd.f32 %v2812_v36, %v338_v10  ;;  %v619_v14 = vadd.f32 %v2817_v37, %v618_v11  ;;  %v3012_v11 = vld [vmem:[%s3137_s10] ss:$0 sm:$0xff] }
 0x14c   :  { %v2097_v15 = vpop.f32.mrf.mxu0  ;;  %v2177_v16 = vpop.f32.mrf.mxu1 }
 0x14d   :  { %826 = vmatmul.mubr.f32.gmra.mxu0 %v279_v25  ;;  %1115 = vmatmul.mubr.f32.gmra.mxu1 %v559_v26  ;;  %v2935_v28 = vpop.permute.xlu0 %1289 }
 0x14e   :  { %831 = vmatprep.mubr.f32.mxu0 %v2337_v59  ;;  %1120 = vmatprep.mubr.f32.mxu1 %v2337_v59  ;;  %v348_v20 = vpop.f32.mrf.mxu0  ;;  %v628_v21 = vpop.f32.mrf.mxu1 }
 0x14f   :  { %v349_v23 = vadd.f32 %v2812_v36, %v348_v20  ;;  %v629_v24 = vadd.f32 %v2817_v37, %v628_v21 }
 0x150   :  { %v2100_v25 = vpop.f32.mrf.mxu0  ;;  %v2180_v26 = vpop.f32.mrf.mxu1 }
 0x151   :  { %832 = vmatmul.mubr.f32.gmra.mxu0 %v284_v29  ;;  %1121 = vmatmul.mubr.f32.gmra.mxu1 %v564_v30  ;;  %v354_v29 = vadd.f32 %v2097_v15, %v2812_v36  ;;  %v634_v30 = vadd.f32 %v2177_v16, %v2817_v37  ;;  %v364_v41 = vadd.f32 %v2100_v25, %v2812_v36 }
 0x152   :  { %837 = vmatprep.mubr.f32.mxu0 %v2337_v59  ;;  %1126 = vmatprep.mubr.f32.mxu1 %v2337_v59  ;;  %v358_v31 = vpop.f32.mrf.mxu0  ;;  %v638_v32 = vpop.f32.mrf.mxu1  ;;  %v644_v42 = vadd.f32 %v2180_v26, %v2817_v37 }
 0x153   :  { %v639_v35 = vadd.f32 %v2817_v37, %v638_v32 }
 0x154   :  { %v2103_v38 = vpop.f32.mrf.mxu0 }
 0x155   :  { %838 = vmatmul.mubr.f32.gmra.mxu0 %v289_v33  ;;  %1127 = vmatmul.mubr.f32.gmra.mxu1 %v569_v34  ;;  %v2941_v33 = vpop.permute.xlu1 %1294  ;;  %v359_v34 = vadd.f32 %v2812_v36, %v358_v31  ;;  %v374_v49 = vadd.f32 %v2103_v38, %v2812_v36 }
 0x156   :  { %843 = vmatprep.mubr.f32.mxu0 %v2337_v59  ;;  %1132 = vmatprep.mubr.f32.mxu1 %v2337_v59 }
 0x159   :  { %844 = vmatmul.mubr.f32.gmra.mxu0 %v294_v39  ;;  %1133 = vmatmul.mubr.f32.gmra.mxu1 %v574_v40  ;;  %v2183_v39 = vpop.f32.mrf.mxu1  ;;  %v2945_v40 = vpop.permute.xlu0 %1299 }
 0x15a   :  { %849 = vmatprep.mubr.f32.mxu0 %v2337_v59  ;;  %1138 = vmatprep.mubr.f32.mxu1 %v2337_v59  ;;  %v2951_v45 = vpop.permute.xlu1 %1304  ;;  %v654_v50 = vadd.f32 %v2183_v39, %v2817_v37 }
 0x15d   :  { %850 = vmatmul.mubr.f32.gmra.mxu0 %v299_v43  ;;  %1139 = vmatmul.mubr.f32.gmra.mxu1 %v579_v44  ;;  %v368_v43 = vpop.f32.mrf.mxu0  ;;  %v648_v44 = vpop.f32.mrf.mxu1 }
 0x15e   :  { %855 = vmatprep.mubr.f32.mxu0 %v2337_v59  ;;  %1144 = vmatprep.mubr.f32.mxu1 %v2337_v59  ;;  %v369_v46 = vadd.f32 %v2812_v36, %v368_v43 }
 0x161   :  { %856 = vmatmul.mubr.f32.gmra.mxu0 %v304_v47  ;;  %1145 = vmatmul.mubr.f32.gmra.mxu1 %v584_v48  ;;  %v649_v47 = vadd.f32 %v2817_v37, %v648_v44  ;;  %v2957_v48 = vpop.permute.xlu0 %1309 }
 0x162   :  { %861 = vmatprep.mubr.f32.mxu0 %v2337_v59  ;;  %1150 = vmatprep.mubr.f32.mxu1 %v2337_v59 }
 0x165   :  { %862 = vmatmul.mubr.f32.gmra.mxu0 %v309_v51  ;;  %1151 = vmatmul.mubr.f32.gmra.mxu1 %v589_v52  ;;  %v2963_v51 = vpop.permute.xlu1 %1314  ;;  %v2965_v52 = vpop.permute.xlu0 %1319 }
 0x166   :  { %867 = vmatprep.mubr.f32.mxu0 %v2337_v59  ;;  %1156 = vmatprep.mubr.f32.mxu1 %v2337_v59 }
 0x169   :  { %868 = vmatmul.mubr.f32.gmra.mxu0 %v314_v55  ;;  %1157 = vmatmul.mubr.f32.gmra.mxu1 %v594_v56  ;;  %v2967_v53 = vpop.permute.xlu1 %1324  ;;  %v2969_v54 = vpop.permute.xlu0 %1329 }
 0x16a   :  { %873 = vmatprep.mubr.f32.mxu0 %v2337_v59  ;;  %1162 = vmatprep.mubr.f32.mxu1 %v2337_v59 }
 0x16d   :  { %874 = vmatmul.mubr.f32.gmra.mxu0 %v319_v60  ;;  %1163 = vmatmul.mubr.f32.gmra.mxu1 %v599_v61  ;;  %v2971_v55 = vpop.permute.xlu1 %1334  ;;  %v2973_v56 = vpop.permute.xlu0 %1339 }
 0x16e   :  { %879 = vmatprep.mubr.f32.mxu0 %v2337_v59  ;;  %1168 = vmatprep.mubr.f32.mxu1 %v2337_v59 }
 0x171   :  { %880 = vmatmul.mubr.f32.gmra.mxu0 %v324_v0  ;;  %1169 = vmatmul.mubr.f32.gmra.mxu1 %v604_v1  ;;  %v2975_v57 = vpop.permute.xlu1 %1344 }
 0x172   :  { %885 = vmatprep.mubr.f32.mxu0 %v2337_v59  ;;  %1174 = vmatprep.mubr.f32.mxu1 %v2337_v59 }
 0x175   :  { %886 = vmatmul.mubr.f32.gmra.mxu0 %v329_v4  ;;  %1175 = vmatmul.mubr.f32.gmra.mxu1 %v609_v5  ;;  %v2979_v36 = vpop.permute.xlu1 %1354 }
 0x176   :  { %891 = vmatprep.mubr.f32.mxu0 %v2337_v59  ;;  %1180 = vmatprep.mubr.f32.mxu1 %v2337_v59 }
 0x179   :  { %892 = vmatmul.mubr.f32.gmra.mxu0 %v334_v8  ;;  %1181 = vmatmul.mubr.f32.gmra.mxu1 %v614_v9  ;;  %v2983_v58 = vpop.permute.xlu1 %1364 }
 0x17a   :  { %897 = vmatprep.mubr.f32.mxu0 %v2337_v59  ;;  %1186 = vmatprep.mubr.f32.mxu1 %v2337_v59 }
 0x17d   :  { %898 = vmatmul.mubr.f32.gmra.mxu0 %v339_v13  ;;  %1187 = vmatmul.mubr.f32.gmra.mxu1 %v619_v14  ;;  %v2987_v61 = vpop.permute.xlu1 %1374  ;;  %v3017_v13 = vld [vmem:[%s3137_s10 + $0x1] ss:$0 sm:$0xff]  ;;  %s2338_s10 = smov [#allocation10]  }
 0x17e   :  { %903 = vmatprep.mubr.f32.mxu0 %v2337_v59  ;;  %1192 = vmatprep.mubr.f32.mxu1 %v2337_v59  ;;  %s1894_s13 = sshll.u32 %s2338_s10, 4  ;;  %s1895_s13 = int_to_ptr.vmem [resolvable:$true] %s1894_s13 }
 0x17f   :  { %s2278_s16 = scalar_lea.vmem %s1895_s13, 8192  ;;  %p2283_p7 = scmp.lt.s32.totalorder %s1895_s13, %s1895_s13 }
 0x180   :  { %p2279_p6 = scmp.ne.s32.totalorder %s1895_s13, %s2278_s16  ;;  %p2284_p8 = scmp.lt.s32.totalorder %s2278_s16, %s2278_s16 }
 0x181   :  { %904 = vmatmul.mubr.f32.gmra.mxu0 %v344_v18  ;;  %1193 = vmatmul.mubr.f32.gmra.mxu1 %v624_v19  ;;  %v2991_v63 = vpop.permute.xlu1 %1384 }
 0x182   :  { %909 = vmatprep.mubr.f32.mxu0 %v2337_v59  ;;  %1198 = vmatprep.mubr.f32.mxu1 %v2337_v59  ;;  %p2285_p9 = por %p2284_p8, %p2283_p7 }
 0x184   :  { %p2286_p10 = pnand %p2285_p9, %p2279_p6 }
 0x185   :  { %910 = vmatmul.mubr.f32.gmra.mxu0 %v349_v23  ;;  %1199 = vmatmul.mubr.f32.gmra.mxu1 %v629_v24  ;;  %v2995_v1 = vpop.permute.xlu1 %1394 }
 0x186   :  { %915 = vmatprep.mubr.f32.mxu0 %v2337_v59  ;;  %1204 = vmatprep.mubr.f32.mxu1 %v2337_v59 }
 0x189   :  { %916 = vmatmul.mubr.f32.gmra.mxu0 %v354_v29  ;;  %1205 = vmatmul.mubr.f32.gmra.mxu1 %v634_v30  ;;  %v2999_v3 = vpop.permute.xlu1 %1404 }
 0x18a   :  { %921 = vmatprep.mubr.f32.mxu0 %v2337_v59  ;;  %1210 = vmatprep.mubr.f32.mxu1 %v2337_v59 }
 0x18d   :  { %922 = vmatmul.mubr.f32.gmra.mxu0 %v359_v34  ;;  %1211 = vmatmul.mubr.f32.gmra.mxu1 %v639_v35  ;;  %v3003_v5 = vpop.permute.xlu1 %1414 }
 0x18e   :  { %927 = vmatprep.mubr.f32.mxu0 %v2337_v59  ;;  %1216 = vmatprep.mubr.f32.mxu1 %v2337_v59 }
 0x191   :  { %928 = vmatmul.mubr.f32.gmra.mxu0 %v364_v41  ;;  %1217 = vmatmul.mubr.f32.gmra.mxu1 %v644_v42  ;;  %v3007_v7 = vpop.permute.xlu1 %1424 }
 0x192   :  { %933 = vmatprep.mubr.f32.mxu0 %v2337_v59  ;;  %1222 = vmatprep.mubr.f32.mxu1 %v2337_v59 }
 0x195   :  { %934 = vmatmul.mubr.f32.gmra.mxu0 %v369_v46  ;;  %1223 = vmatmul.mubr.f32.gmra.mxu1 %v649_v47  ;;  %v1531_v19 = vpop.permute.xlu1 %1530 }
 0x196   :  { %939 = vmatprep.mubr.f32.mxu0 %v2337_v59  ;;  %1228 = vmatprep.mubr.f32.mxu1 %v2337_v59  ;;  %v2977_v59 = vpop.permute.xlu0 %1349 }
 0x199   :  { %940 = vmatmul.mubr.f32.gmra.mxu0 %v374_v49  ;;  %1229 = vmatmul.mubr.f32.gmra.mxu1 %v654_v50 }
 0x19a   :  { %v2981_v37 = vpop.permute.xlu0 %1359 }
 0x19e   :  { %v2985_v60 = vpop.permute.xlu0 %1369 }
 0x1a2   :  { %v2989_v62 = vpop.permute.xlu0 %1379 }
 0x1a6   :  { %v2993_v0 = vpop.permute.xlu0 %1389 }
 0x1aa   :  { %v2997_v2 = vpop.permute.xlu0 %1399 }
 0x1ae   :  { %v3001_v4 = vpop.permute.xlu0 %1409 }
 0x1b2   :  { %v3005_v6 = vpop.permute.xlu0 %1419 }
 0x1b6   :  { %v1526_v8 = vpop.permute.xlu0 %1525 }
 0x1dd   :  { %v755_v9 = vpop.f32.mrf.mxu0  ;;  %v1044_v10 = vpop.f32.mrf.mxu1 }
 0x1de   :  { %v1427_v14 = vmul.f32 %v2915_v12, %v755_v9  ;;  %v1683_v15 = vmul.f32 %v1526_v8, %v1044_v10  ;;  %v1536_v12 = vpop.permute.xlu0 %1535 }
 0x1df   :  { %v757_v16 = vpop.f32.mrf.mxu0  ;;  %v1046_v18 = vpop.f32.mrf.mxu1 }
 0x1e0   :  { %1459 = vst [vmem:[#allocation10] sm:$0xff] %v1427_v14  ;;  %1715 = vst [vmem:[#allocation10 + $0x8] sm:$0xff] %v1683_v15  ;;  %v1754_v20 = vadd.f32 %v3012_v11, %v757_v16  ;;  %v1825_v21 = vadd.f32 %v3017_v13, %v1046_v18 }
 0x1e1   :  { %v761_v23 = vpop.f32.mrf.mxu0  ;;  %v1050_v24 = vpop.f32.mrf.mxu1 }
 0x1e2   :  { %1786 = vst [vmem:[#allocation11] sm:$0xff] %v1754_v20  ;;  %1857 = vst [vmem:[#allocation11 + $0x8] sm:$0xff] %v1825_v21  ;;  %v1428_v25 = vmul.f32 %v2925_v22, %v761_v23  ;;  %v1684_v26 = vmul.f32 %v1531_v19, %v1050_v24  ;;  %v1541_v22 = vpop.permute.xlu1 %1540 }
 0x1e3   :  { %v763_v29 = vpop.f32.mrf.mxu0  ;;  %v1052_v30 = vpop.f32.mrf.mxu1 }
 0x1e4   :  { %1460 = vst [vmem:[#allocation10 + $0x10] sm:$0xff] %v1428_v25  ;;  %1716 = vst [vmem:[#allocation10 + $0x18] sm:$0xff] %v1684_v26  ;;  %v1755_v31 = vadd.f32 %v3012_v11, %v763_v29  ;;  %v1826_v32 = vadd.f32 %v3017_v13, %v1052_v30 }
 0x1e5   :  { %v767_v34 = vpop.f32.mrf.mxu0  ;;  %v1056_v35 = vpop.f32.mrf.mxu1 }
 0x1e6   :  { %1787 = vst [vmem:[#allocation11 + $0x10] sm:$0xff] %v1755_v31  ;;  %1858 = vst [vmem:[#allocation11 + $0x18] sm:$0xff] %v1826_v32  ;;  %v1429_v38 = vmul.f32 %v2921_v17, %v767_v34  ;;  %v1685_v39 = vmul.f32 %v1536_v12, %v1056_v35  ;;  %v1546_v17 = vpop.permute.xlu0 %1545 }
 0x1e7   :  { %v769_v41 = vpop.f32.mrf.mxu0  ;;  %v1058_v42 = vpop.f32.mrf.mxu1 }
 0x1e8   :  { %1461 = vst [vmem:[#allocation10 + $0x20] sm:$0xff] %v1429_v38  ;;  %1717 = vst [vmem:[#allocation10 + $0x28] sm:$0xff] %v1685_v39  ;;  %v1756_v43 = vadd.f32 %v3012_v11, %v769_v41  ;;  %v1827_v44 = vadd.f32 %v3017_v13, %v1058_v42 }
 0x1e9   :  { %v773_v46 = vpop.f32.mrf.mxu0  ;;  %v1062_v47 = vpop.f32.mrf.mxu1 }
 0x1ea   :  { %1788 = vst [vmem:[#allocation11 + $0x20] sm:$0xff] %v1756_v43  ;;  %1859 = vst [vmem:[#allocation11 + $0x28] sm:$0xff] %v1827_v44  ;;  %v1430_v49 = vmul.f32 %v2931_v27, %v773_v46  ;;  %v1686_v50 = vmul.f32 %v1541_v22, %v1062_v47  ;;  %v1551_v27 = vpop.permute.xlu1 %1550 }
 0x1eb   :  { %v775_v8 = vpop.f32.mrf.mxu0  ;;  %v1064_v9 = vpop.f32.mrf.mxu1 }
 0x1ec   :  { %1462 = vst [vmem:[#allocation10 + $0x30] sm:$0xff] %v1430_v49  ;;  %1718 = vst [vmem:[#allocation10 + $0x38] sm:$0xff] %v1686_v50  ;;  %v1757_v10 = vadd.f32 %v3012_v11, %v775_v8  ;;  %v1828_v14 = vadd.f32 %v3017_v13, %v1064_v9 }
 0x1ed   :  { %v779_v15 = vpop.f32.mrf.mxu0  ;;  %v1068_v16 = vpop.f32.mrf.mxu1 }
 0x1ee   :  { %1789 = vst [vmem:[#allocation11 + $0x30] sm:$0xff] %v1757_v10  ;;  %1860 = vst [vmem:[#allocation11 + $0x38] sm:$0xff] %v1828_v14  ;;  %v1431_v18 = vmul.f32 %v2935_v28, %v779_v15  ;;  %v1687_v19 = vmul.f32 %v1546_v17, %v1068_v16  ;;  %v1556_v28 = vpop.permute.xlu0 %1555 }
 0x1ef   :  { %v781_v20 = vpop.f32.mrf.mxu0  ;;  %v1070_v21 = vpop.f32.mrf.mxu1 }
 0x1f0   :  { %1463 = vst [vmem:[#allocation10 + $0x40] sm:$0xff] %v1431_v18  ;;  %1719 = vst [vmem:[#allocation10 + $0x48] sm:$0xff] %v1687_v19  ;;  %v1758_v23 = vadd.f32 %v3012_v11, %v781_v20  ;;  %v1829_v24 = vadd.f32 %v3017_v13, %v1070_v21 }
 0x1f1   :  { %v785_v25 = vpop.f32.mrf.mxu0  ;;  %v1074_v26 = vpop.f32.mrf.mxu1 }
 0x1f2   :  { %1790 = vst [vmem:[#allocation11 + $0x40] sm:$0xff] %v1758_v23  ;;  %1861 = vst [vmem:[#allocation11 + $0x48] sm:$0xff] %v1829_v24  ;;  %v1432_v29 = vmul.f32 %v2941_v33, %v785_v25  ;;  %v1688_v30 = vmul.f32 %v1551_v27, %v1074_v26  ;;  %v1561_v33 = vpop.permute.xlu1 %1560 }
 0x1f3   :  { %v787_v12 = vpop.f32.mrf.mxu0  ;;  %v1076_v31 = vpop.f32.mrf.mxu1 }
 0x1f4   :  { %1464 = vst [vmem:[#allocation10 + $0x50] sm:$0xff] %v1432_v29  ;;  %1720 = vst [vmem:[#allocation10 + $0x58] sm:$0xff] %v1688_v30  ;;  %v1759_v32 = vadd.f32 %v3012_v11, %v787_v12  ;;  %v1830_v34 = vadd.f32 %v3017_v13, %v1076_v31 }
 0x1f5   :  { %v791_v35 = vpop.f32.mrf.mxu0  ;;  %v1080_v38 = vpop.f32.mrf.mxu1 }
 0x1f6   :  { %1791 = vst [vmem:[#allocation11 + $0x50] sm:$0xff] %v1759_v32  ;;  %1862 = vst [vmem:[#allocation11 + $0x58] sm:$0xff] %v1830_v34  ;;  %v1433_v39 = vmul.f32 %v2945_v40, %v791_v35  ;;  %v1689_v41 = vmul.f32 %v1556_v28, %v1080_v38  ;;  %v1566_v40 = vpop.permute.xlu0 %1565 }
 0x1f7   :  { %v793_v42 = vpop.f32.mrf.mxu0  ;;  %v1082_v22 = vpop.f32.mrf.mxu1 }
 0x1f8   :  { %1465 = vst [vmem:[#allocation10 + $0x60] sm:$0xff] %v1433_v39  ;;  %1721 = vst [vmem:[#allocation10 + $0x68] sm:$0xff] %v1689_v41  ;;  %v1760_v43 = vadd.f32 %v3012_v11, %v793_v42  ;;  %v1831_v44 = vadd.f32 %v3017_v13, %v1082_v22 }
 0x1f9   :  { %v797_v46 = vpop.f32.mrf.mxu0  ;;  %v1086_v47 = vpop.f32.mrf.mxu1 }
 0x1fa   :  { %1792 = vst [vmem:[#allocation11 + $0x60] sm:$0xff] %v1760_v43  ;;  %1863 = vst [vmem:[#allocation11 + $0x68] sm:$0xff] %v1831_v44  ;;  %v1434_v49 = vmul.f32 %v2951_v45, %v797_v46  ;;  %v1690_v50 = vmul.f32 %v1561_v33, %v1086_v47  ;;  %v1571_v45 = vpop.permute.xlu1 %1570 }
 0x1fb   :  { %v799_v8 = vpop.f32.mrf.mxu0  ;;  %v1088_v9 = vpop.f32.mrf.mxu1 }
 0x1fc   :  { %1466 = vst [vmem:[#allocation10 + $0x70] sm:$0xff] %v1434_v49  ;;  %1722 = vst [vmem:[#allocation10 + $0x78] sm:$0xff] %v1690_v50  ;;  %v1761_v17 = vadd.f32 %v3012_v11, %v799_v8  ;;  %v1832_v10 = vadd.f32 %v3017_v13, %v1088_v9 }
 0x1fd   :  { %v803_v14 = vpop.f32.mrf.mxu0  ;;  %v1092_v15 = vpop.f32.mrf.mxu1 }
 0x1fe   :  { %1793 = vst [vmem:[#allocation11 + $0x70] sm:$0xff] %v1761_v17  ;;  %1864 = vst [vmem:[#allocation11 + $0x78] sm:$0xff] %v1832_v10  ;;  %v1435_v16 = vmul.f32 %v2957_v48, %v803_v14  ;;  %v1691_v18 = vmul.f32 %v1566_v40, %v1092_v15  ;;  %v1576_v48 = vpop.permute.xlu0 %1575 }
 0x1ff   :  { %v805_v19 = vpop.f32.mrf.mxu0  ;;  %v1094_v20 = vpop.f32.mrf.mxu1 }
 0x200   :  { %1467 = vst [vmem:[#allocation10 + $0x80] sm:$0xff] %v1435_v16  ;;  %1723 = vst [vmem:[#allocation10 + $0x88] sm:$0xff] %v1691_v18  ;;  %v1762_v21 = vadd.f32 %v3012_v11, %v805_v19  ;;  %v1833_v27 = vadd.f32 %v3017_v13, %v1094_v20 }
 0x201   :  { %v809_v23 = vpop.f32.mrf.mxu0  ;;  %v1098_v24 = vpop.f32.mrf.mxu1 }
 0x202   :  { %1794 = vst [vmem:[#allocation11 + $0x80] sm:$0xff] %v1762_v21  ;;  %1865 = vst [vmem:[#allocation11 + $0x88] sm:$0xff] %v1833_v27  ;;  %v1436_v25 = vmul.f32 %v2963_v51, %v809_v23  ;;  %v1692_v26 = vmul.f32 %v1571_v45, %v1098_v24  ;;  %v1581_v51 = vpop.permute.xlu1 %1580 }
 0x203   :  { %v811_v29 = vpop.f32.mrf.mxu0  ;;  %v1100_v30 = vpop.f32.mrf.mxu1 }
 0x204   :  { %1468 = vst [vmem:[#allocation10 + $0x90] sm:$0xff] %v1436_v25  ;;  %1724 = vst [vmem:[#allocation10 + $0x98] sm:$0xff] %v1692_v26  ;;  %v1763_v12 = vadd.f32 %v3012_v11, %v811_v29  ;;  %v1834_v31 = vadd.f32 %v3017_v13, %v1100_v30 }
 0x205   :  { %v815_v28 = vpop.f32.mrf.mxu0  ;;  %v1104_v32 = vpop.f32.mrf.mxu1 }
 0x206   :  { %1795 = vst [vmem:[#allocation11 + $0x90] sm:$0xff] %v1763_v12  ;;  %1866 = vst [vmem:[#allocation11 + $0x98] sm:$0xff] %v1834_v31  ;;  %v1437_v34 = vmul.f32 %v2965_v52, %v815_v28  ;;  %v1693_v35 = vmul.f32 %v1576_v48, %v1104_v32  ;;  %v1586_v52 = vpop.permute.xlu0 %1585 }
 0x207   :  { %v817_v38 = vpop.f32.mrf.mxu0  ;;  %v1106_v39 = vpop.f32.mrf.mxu1 }
 0x208   :  { %1469 = vst [vmem:[#allocation10 + $0xa0] sm:$0xff] %v1437_v34  ;;  %1725 = vst [vmem:[#allocation10 + $0xa8] sm:$0xff] %v1693_v35  ;;  %v1764_v41 = vadd.f32 %v3012_v11, %v817_v38  ;;  %v1835_v42 = vadd.f32 %v3017_v13, %v1106_v39 }
 0x209   :  { %v821_v22 = vpop.f32.mrf.mxu0  ;;  %v1110_v33 = vpop.f32.mrf.mxu1 }
 0x20a   :  { %1796 = vst [vmem:[#allocation11 + $0xa0] sm:$0xff] %v1764_v41  ;;  %1867 = vst [vmem:[#allocation11 + $0xa8] sm:$0xff] %v1835_v42  ;;  %v1438_v43 = vmul.f32 %v2967_v53, %v821_v22  ;;  %v1694_v44 = vmul.f32 %v1581_v51, %v1110_v33  ;;  %v1591_v53 = vpop.permute.xlu1 %1590 }
 0x20b   :  { %v823_v46 = vpop.f32.mrf.mxu0  ;;  %v1112_v47 = vpop.f32.mrf.mxu1 }
 0x20c   :  { %1470 = vst [vmem:[#allocation10 + $0xb0] sm:$0xff] %v1438_v43  ;;  %1726 = vst [vmem:[#allocation10 + $0xb8] sm:$0xff] %v1694_v44  ;;  %v1765_v49 = vadd.f32 %v3012_v11, %v823_v46  ;;  %v1836_v50 = vadd.f32 %v3017_v13, %v1112_v47 }
 0x20d   :  { %v827_v8 = vpop.f32.mrf.mxu0  ;;  %v1116_v9 = vpop.f32.mrf.mxu1 }
 0x20e   :  { %1797 = vst [vmem:[#allocation11 + $0xb0] sm:$0xff] %v1765_v49  ;;  %1868 = vst [vmem:[#allocation11 + $0xb8] sm:$0xff] %v1836_v50  ;;  %v1439_v40 = vmul.f32 %v2969_v54, %v827_v8  ;;  %v1695_v17 = vmul.f32 %v1586_v52, %v1116_v9  ;;  %v1596_v54 = vpop.permute.xlu0 %1595 }
 0x20f   :  { %v829_v10 = vpop.f32.mrf.mxu0  ;;  %v1118_v14 = vpop.f32.mrf.mxu1 }
 0x210   :  { %1471 = vst [vmem:[#allocation10 + $0xc0] sm:$0xff] %v1439_v40  ;;  %1727 = vst [vmem:[#allocation10 + $0xc8] sm:$0xff] %v1695_v17  ;;  %v1766_v15 = vadd.f32 %v3012_v11, %v829_v10  ;;  %v1837_v16 = vadd.f32 %v3017_v13, %v1118_v14 }
 0x211   :  { %v833_v18 = vpop.f32.mrf.mxu0  ;;  %v1122_v19 = vpop.f32.mrf.mxu1 }
 0x212   :  { %1798 = vst [vmem:[#allocation11 + $0xc0] sm:$0xff] %v1766_v15  ;;  %1869 = vst [vmem:[#allocation11 + $0xc8] sm:$0xff] %v1837_v16  ;;  %v1440_v20 = vmul.f32 %v2971_v55, %v833_v18  ;;  %v1696_v45 = vmul.f32 %v1591_v53, %v1122_v19  ;;  %v1601_v55 = vpop.permute.xlu1 %1600 }
 0x213   :  { %v835_v21 = vpop.f32.mrf.mxu0  ;;  %v1124_v27 = vpop.f32.mrf.mxu1 }
 0x214   :  { %1472 = vst [vmem:[#allocation10 + $0xd0] sm:$0xff] %v1440_v20  ;;  %1728 = vst [vmem:[#allocation10 + $0xd8] sm:$0xff] %v1696_v45  ;;  %v1767_v23 = vadd.f32 %v3012_v11, %v835_v21  ;;  %v1838_v24 = vadd.f32 %v3017_v13, %v1124_v27 }
 0x215   :  { %v839_v25 = vpop.f32.mrf.mxu0  ;;  %v1128_v26 = vpop.f32.mrf.mxu1 }
 0x216   :  { %1799 = vst [vmem:[#allocation11 + $0xd0] sm:$0xff] %v1767_v23  ;;  %1870 = vst [vmem:[#allocation11 + $0xd8] sm:$0xff] %v1838_v24  ;;  %v1441_v29 = vmul.f32 %v2973_v56, %v839_v25  ;;  %v1697_v30 = vmul.f32 %v1596_v54, %v1128_v26  ;;  %v1606_v56 = vpop.permute.xlu0 %1605 }
 0x217   :  { %v841_v48 = vpop.f32.mrf.mxu0  ;;  %v1130_v12 = vpop.f32.mrf.mxu1 }
 0x218   :  { %1473 = vst [vmem:[#allocation10 + $0xe0] sm:$0xff] %v1441_v29  ;;  %1729 = vst [vmem:[#allocation10 + $0xe8] sm:$0xff] %v1697_v30  ;;  %v1768_v31 = vadd.f32 %v3012_v11, %v841_v48  ;;  %v1839_v28 = vadd.f32 %v3017_v13, %v1130_v12 }
 0x219   :  { %v845_v32 = vpop.f32.mrf.mxu0  ;;  %v1134_v34 = vpop.f32.mrf.mxu1 }
 0x21a   :  { %1800 = vst [vmem:[#allocation11 + $0xe0] sm:$0xff] %v1768_v31  ;;  %1871 = vst [vmem:[#allocation11 + $0xe8] sm:$0xff] %v1839_v28  ;;  %v1442_v35 = vmul.f32 %v2975_v57, %v845_v32  ;;  %v1698_v38 = vmul.f32 %v1601_v55, %v1134_v34  ;;  %v1611_v57 = vpop.permute.xlu1 %1610 }
 0x21b   :  { %v847_v39 = vpop.f32.mrf.mxu0  ;;  %v1136_v51 = vpop.f32.mrf.mxu1 }
 0x21c   :  { %1474 = vst [vmem:[#allocation10 + $0xf0] sm:$0xff] %v1442_v35  ;;  %1730 = vst [vmem:[#allocation10 + $0xf8] sm:$0xff] %v1698_v38  ;;  %v1769_v41 = vadd.f32 %v3012_v11, %v847_v39  ;;  %v1840_v42 = vadd.f32 %v3017_v13, %v1136_v51 }
 0x21d   :  { %v851_v22 = vpop.f32.mrf.mxu0  ;;  %v1140_v33 = vpop.f32.mrf.mxu1 }
 0x21e   :  { %1801 = vst [vmem:[#allocation11 + $0xf0] sm:$0xff] %v1769_v41  ;;  %1872 = vst [vmem:[#allocation11 + $0xf8] sm:$0xff] %v1840_v42  ;;  %v1443_v43 = vmul.f32 %v2977_v59, %v851_v22  ;;  %v1699_v44 = vmul.f32 %v1606_v56, %v1140_v33  ;;  %v1616_v59 = vpop.permute.xlu0 %1615 }
 0x21f   :  { %v853_v46 = vpop.f32.mrf.mxu0  ;;  %v1142_v47 = vpop.f32.mrf.mxu1 }
 0x220   :  { %1475 = vst [vmem:[#allocation10 + $0x100] sm:$0xff] %v1443_v43  ;;  %1731 = vst [vmem:[#allocation10 + $0x108] sm:$0xff] %v1699_v44  ;;  %v1770_v52 = vadd.f32 %v3012_v11, %v853_v46  ;;  %v1841_v49 = vadd.f32 %v3017_v13, %v1142_v47 }
 0x221   :  { %v857_v50 = vpop.f32.mrf.mxu0  ;;  %v1146_v8 = vpop.f32.mrf.mxu1 }
 0x222   :  { %1802 = vst [vmem:[#allocation11 + $0x100] sm:$0xff] %v1770_v52  ;;  %1873 = vst [vmem:[#allocation11 + $0x108] sm:$0xff] %v1841_v49  ;;  %v1444_v9 = vmul.f32 %v2979_v36, %v857_v50  ;;  %v1700_v40 = vmul.f32 %v1611_v57, %v1146_v8  ;;  %v1621_v36 = vpop.permute.xlu1 %1620 }
 0x223   :  { %v859_v17 = vpop.f32.mrf.mxu0  ;;  %v1148_v10 = vpop.f32.mrf.mxu1 }
 0x224   :  { %1476 = vst [vmem:[#allocation10 + $0x110] sm:$0xff] %v1444_v9  ;;  %1732 = vst [vmem:[#allocation10 + $0x118] sm:$0xff] %v1700_v40  ;;  %v1771_v14 = vadd.f32 %v3012_v11, %v859_v17  ;;  %v1842_v53 = vadd.f32 %v3017_v13, %v1148_v10 }
 0x225   :  { %v863_v15 = vpop.f32.mrf.mxu0  ;;  %v1152_v16 = vpop.f32.mrf.mxu1 }
 0x226   :  { %1803 = vst [vmem:[#allocation11 + $0x110] sm:$0xff] %v1771_v14  ;;  %1874 = vst [vmem:[#allocation11 + $0x118] sm:$0xff] %v1842_v53  ;;  %v1445_v18 = vmul.f32 %v2981_v37, %v863_v15  ;;  %v1701_v19 = vmul.f32 %v1616_v59, %v1152_v16  ;;  %v1626_v37 = vpop.permute.xlu0 %1625 }
 0x227   :  { %v865_v20 = vpop.f32.mrf.mxu0  ;;  %v1154_v45 = vpop.f32.mrf.mxu1 }
 0x228   :  { %1477 = vst [vmem:[#allocation10 + $0x120] sm:$0xff] %v1445_v18  ;;  %1733 = vst [vmem:[#allocation10 + $0x128] sm:$0xff] %v1701_v19  ;;  %v1772_v21 = vadd.f32 %v3012_v11, %v865_v20  ;;  %v1843_v27 = vadd.f32 %v3017_v13, %v1154_v45 }
 0x229   :  { %v869_v54 = vpop.f32.mrf.mxu0  ;;  %v1158_v23 = vpop.f32.mrf.mxu1 }
 0x22a   :  { %1804 = vst [vmem:[#allocation11 + $0x120] sm:$0xff] %v1772_v21  ;;  %1875 = vst [vmem:[#allocation11 + $0x128] sm:$0xff] %v1843_v27  ;;  %v1446_v24 = vmul.f32 %v2983_v58, %v869_v54  ;;  %v1702_v25 = vmul.f32 %v1621_v36, %v1158_v23  ;;  %v1631_v58 = vpop.permute.xlu1 %1630 }
 0x22b   :  { %v871_v26 = vpop.f32.mrf.mxu0  ;;  %v1160_v29 = vpop.f32.mrf.mxu1 }
 0x22c   :  { %1478 = vst [vmem:[#allocation10 + $0x130] sm:$0xff] %v1446_v24  ;;  %1734 = vst [vmem:[#allocation10 + $0x138] sm:$0xff] %v1702_v25  ;;  %v1773_v30 = vadd.f32 %v3012_v11, %v871_v26  ;;  %v1844_v48 = vadd.f32 %v3017_v13, %v1160_v29 }
 0x22d   :  { %v875_v12 = vpop.f32.mrf.mxu0  ;;  %v1164_v55 = vpop.f32.mrf.mxu1 }
 0x22e   :  { %1805 = vst [vmem:[#allocation11 + $0x130] sm:$0xff] %v1773_v30  ;;  %1876 = vst [vmem:[#allocation11 + $0x138] sm:$0xff] %v1844_v48  ;;  %v1447_v31 = vmul.f32 %v2985_v60, %v875_v12  ;;  %v1703_v28 = vmul.f32 %v1626_v37, %v1164_v55  ;;  %v1636_v60 = vpop.permute.xlu0 %1635 }
 0x22f   :  { %v877_v32 = vpop.f32.mrf.mxu0  ;;  %v1166_v34 = vpop.f32.mrf.mxu1 }
 0x230   :  { %1479 = vst [vmem:[#allocation10 + $0x140] sm:$0xff] %v1447_v31  ;;  %1735 = vst [vmem:[#allocation10 + $0x148] sm:$0xff] %v1703_v28  ;;  %v1774_v35 = vadd.f32 %v3012_v11, %v877_v32  ;;  %v1845_v38 = vadd.f32 %v3017_v13, %v1166_v34 }
 0x231   :  { %v881_v39 = vpop.f32.mrf.mxu0  ;;  %v1170_v51 = vpop.f32.mrf.mxu1 }
 0x232   :  { %1806 = vst [vmem:[#allocation11 + $0x140] sm:$0xff] %v1774_v35  ;;  %1877 = vst [vmem:[#allocation11 + $0x148] sm:$0xff] %v1845_v38  ;;  %v1448_v56 = vmul.f32 %v2987_v61, %v881_v39  ;;  %v1704_v41 = vmul.f32 %v1631_v58, %v1170_v51  ;;  %v1641_v61 = vpop.permute.xlu1 %1640 }
 0x233   :  { %v883_v42 = vpop.f32.mrf.mxu0  ;;  %v1172_v22 = vpop.f32.mrf.mxu1 }
 0x234   :  { %1480 = vst [vmem:[#allocation10 + $0x150] sm:$0xff] %v1448_v56  ;;  %1736 = vst [vmem:[#allocation10 + $0x158] sm:$0xff] %v1704_v41  ;;  %v1775_v33 = vadd.f32 %v3012_v11, %v883_v42  ;;  %v1846_v43 = vadd.f32 %v3017_v13, %v1172_v22 }
 0x235   :  { %v887_v44 = vpop.f32.mrf.mxu0  ;;  %v1176_v46 = vpop.f32.mrf.mxu1 }
 0x236   :  { %1807 = vst [vmem:[#allocation11 + $0x150] sm:$0xff] %v1775_v33  ;;  %1878 = vst [vmem:[#allocation11 + $0x158] sm:$0xff] %v1846_v43  ;;  %v1449_v47 = vmul.f32 %v2989_v62, %v887_v44  ;;  %v1705_v57 = vmul.f32 %v1636_v60, %v1176_v46  ;;  %v1646_v62 = vpop.permute.xlu0 %1645 }
 0x237   :  { %v889_v52 = vpop.f32.mrf.mxu0  ;;  %v1178_v49 = vpop.f32.mrf.mxu1 }
 0x238   :  { %1481 = vst [vmem:[#allocation10 + $0x160] sm:$0xff] %v1449_v47  ;;  %1737 = vst [vmem:[#allocation10 + $0x168] sm:$0xff] %v1705_v57  ;;  %v1776_v50 = vadd.f32 %v3012_v11, %v889_v52  ;;  %v1847_v8 = vadd.f32 %v3017_v13, %v1178_v49 }
 0x239   :  { %v893_v9 = vpop.f32.mrf.mxu0  ;;  %v1182_v40 = vpop.f32.mrf.mxu1 }
 0x23a   :  { %1808 = vst [vmem:[#allocation11 + $0x160] sm:$0xff] %v1776_v50  ;;  %1879 = vst [vmem:[#allocation11 + $0x168] sm:$0xff] %v1847_v8  ;;  %v1450_v17 = vmul.f32 %v2991_v63, %v893_v9  ;;  %v1706_v10 = vmul.f32 %v1641_v61, %v1182_v40  ;;  %v1651_v63 = vpop.permute.xlu1 %1650 }
 0x23b   :  { %v895_v59 = vpop.f32.mrf.mxu0  ;;  %v1184_v14 = vpop.f32.mrf.mxu1 }
 0x23c   :  { %1482 = vst [vmem:[#allocation10 + $0x170] sm:$0xff] %v1450_v17  ;;  %1738 = vst [vmem:[#allocation10 + $0x178] sm:$0xff] %v1706_v10  ;;  %v1777_v53 = vadd.f32 %v3012_v11, %v895_v59  ;;  %v1848_v15 = vadd.f32 %v3017_v13, %v1184_v14 }
 0x23d   :  { %v899_v16 = vpop.f32.mrf.mxu0  ;;  %v1188_v18 = vpop.f32.mrf.mxu1 }
 0x23e   :  { %1809 = vst [vmem:[#allocation11 + $0x170] sm:$0xff] %v1777_v53  ;;  %1880 = vst [vmem:[#allocation11 + $0x178] sm:$0xff] %v1848_v15  ;;  %v1451_v19 = vmul.f32 %v2993_v0, %v899_v16  ;;  %v1707_v20 = vmul.f32 %v1646_v62, %v1188_v18  ;;  %v1656_v0 = vpop.permute.xlu0 %1655 }
 0x23f   :  { %v901_v45 = vpop.f32.mrf.mxu0  ;;  %v1190_v36 = vpop.f32.mrf.mxu1 }
 0x240   :  { %1483 = vst [vmem:[#allocation10 + $0x180] sm:$0xff] %v1451_v19  ;;  %1739 = vst [vmem:[#allocation10 + $0x188] sm:$0xff] %v1707_v20  ;;  %v1778_v21 = vadd.f32 %v3012_v11, %v901_v45  ;;  %v1849_v27 = vadd.f32 %v3017_v13, %v1190_v36 }
 0x241   :  { %v905_v54 = vpop.f32.mrf.mxu0  ;;  %v1194_v23 = vpop.f32.mrf.mxu1 }
 0x242   :  { %1810 = vst [vmem:[#allocation11 + $0x180] sm:$0xff] %v1778_v21  ;;  %1881 = vst [vmem:[#allocation11 + $0x188] sm:$0xff] %v1849_v27  ;;  %v1452_v24 = vmul.f32 %v2995_v1, %v905_v54  ;;  %v1708_v25 = vmul.f32 %v1651_v63, %v1194_v23  ;;  %v1661_v1 = vpop.permute.xlu1 %1660 }
 0x243   :  { %v907_v26 = vpop.f32.mrf.mxu0  ;;  %v1196_v29 = vpop.f32.mrf.mxu1 }
 0x244   :  { %1484 = vst [vmem:[#allocation10 + $0x190] sm:$0xff] %v1452_v24  ;;  %1740 = vst [vmem:[#allocation10 + $0x198] sm:$0xff] %v1708_v25  ;;  %v1779_v37 = vadd.f32 %v3012_v11, %v907_v26  ;;  %v1850_v30 = vadd.f32 %v3017_v13, %v1196_v29 }
 0x245   :  { %v911_v48 = vpop.f32.mrf.mxu0  ;;  %v1200_v12 = vpop.f32.mrf.mxu1 }
 0x246   :  { %1811 = vst [vmem:[#allocation11 + $0x190] sm:$0xff] %v1779_v37  ;;  %1882 = vst [vmem:[#allocation11 + $0x198] sm:$0xff] %v1850_v30  ;;  %v1453_v55 = vmul.f32 %v2997_v2, %v911_v48  ;;  %v1709_v31 = vmul.f32 %v1656_v0, %v1200_v12  ;;  %v1666_v2 = vpop.permute.xlu0 %1665 }
 0x247   :  { %v913_v28 = vpop.f32.mrf.mxu0  ;;  %v1202_v32 = vpop.f32.mrf.mxu1 }
 0x248   :  { %1485 = vst [vmem:[#allocation10 + $0x1a0] sm:$0xff] %v1453_v55  ;;  %1741 = vst [vmem:[#allocation10 + $0x1a8] sm:$0xff] %v1709_v31  ;;  %v1780_v34 = vadd.f32 %v3012_v11, %v913_v28  ;;  %v1851_v58 = vadd.f32 %v3017_v13, %v1202_v32 }
 0x249   :  { %v917_v35 = vpop.f32.mrf.mxu0  ;;  %v1206_v38 = vpop.f32.mrf.mxu1 }
 0x24a   :  { %1812 = vst [vmem:[#allocation11 + $0x1a0] sm:$0xff] %v1780_v34  ;;  %1883 = vst [vmem:[#allocation11 + $0x1a8] sm:$0xff] %v1851_v58  ;;  %v1454_v39 = vmul.f32 %v2999_v3, %v917_v35  ;;  %v1710_v51 = vmul.f32 %v1661_v1, %v1206_v38  ;;  %v1671_v3 = vpop.permute.xlu1 %1670 }
 0x24b   :  { %v919_v56 = vpop.f32.mrf.mxu0  ;;  %v1208_v41 = vpop.f32.mrf.mxu1 }
 0x24c   :  { %1486 = vst [vmem:[#allocation10 + $0x1b0] sm:$0xff] %v1454_v39  ;;  %1742 = vst [vmem:[#allocation10 + $0x1b8] sm:$0xff] %v1710_v51  ;;  %v1781_v42 = vadd.f32 %v3012_v11, %v919_v56  ;;  %v1852_v22 = vadd.f32 %v3017_v13, %v1208_v41 }
 0x24d   :  { %v923_v60 = vpop.f32.mrf.mxu0  ;;  %v1212_v33 = vpop.f32.mrf.mxu1 }
 0x24e   :  { %1813 = vst [vmem:[#allocation11 + $0x1b0] sm:$0xff] %v1781_v42  ;;  %1884 = vst [vmem:[#allocation11 + $0x1b8] sm:$0xff] %v1852_v22  ;;  %v1455_v43 = vmul.f32 %v3001_v4, %v923_v60  ;;  %v1711_v44 = vmul.f32 %v1666_v2, %v1212_v33  ;;  %v1676_v4 = vpop.permute.xlu0 %1675 }
 0x24f   :  { %v925_v46 = vpop.f32.mrf.mxu0  ;;  %v1214_v47 = vpop.f32.mrf.mxu1 }
 0x250   :  { %1487 = vst [vmem:[#allocation10 + $0x1c0] sm:$0xff] %v1455_v43  ;;  %1743 = vst [vmem:[#allocation10 + $0x1c8] sm:$0xff] %v1711_v44  ;;  %v1782_v57 = vadd.f32 %v3012_v11, %v925_v46  ;;  %v1853_v52 = vadd.f32 %v3017_v13, %v1214_v47 }
 0x251   :  { %v929_v49 = vpop.f32.mrf.mxu0  ;;  %v1218_v61 = vpop.f32.mrf.mxu1 }
 0x252   :  { %1814 = vst [vmem:[#allocation11 + $0x1c0] sm:$0xff] %v1782_v57  ;;  %1885 = vst [vmem:[#allocation11 + $0x1c8] sm:$0xff] %v1853_v52  ;;  %v1456_v50 = vmul.f32 %v3003_v5, %v929_v49  ;;  %v1712_v8 = vmul.f32 %v1671_v3, %v1218_v61  ;;  %v1681_v5 = vpop.permute.xlu1 %1680 }
 0x253   :  { %v931_v9 = vpop.f32.mrf.mxu0  ;;  %v1220_v40 = vpop.f32.mrf.mxu1 }
 0x254   :  { %1488 = vst [vmem:[#allocation10 + $0x1d0] sm:$0xff] %v1456_v50  ;;  %1744 = vst [vmem:[#allocation10 + $0x1d8] sm:$0xff] %v1712_v8  ;;  %v1783_v17 = vadd.f32 %v3012_v11, %v931_v9  ;;  %v1854_v10 = vadd.f32 %v3017_v13, %v1220_v40 }
 0x255   :  { %v935_v59 = vpop.f32.mrf.mxu0  ;;  %v1224_v14 = vpop.f32.mrf.mxu1 }
 0x256   :  { %1815 = vst [vmem:[#allocation11 + $0x1d0] sm:$0xff] %v1783_v17  ;;  %1886 = vst [vmem:[#allocation11 + $0x1d8] sm:$0xff] %v1854_v10  ;;  %v1457_v62 = vmul.f32 %v3005_v6, %v935_v59  ;;  %v1713_v53 = vmul.f32 %v1676_v4, %v1224_v14 }
 0x257   :  { %v937_v15 = vpop.f32.mrf.mxu0  ;;  %v1226_v16 = vpop.f32.mrf.mxu1 }
 0x258   :  { %1489 = vst [vmem:[#allocation10 + $0x1e0] sm:$0xff] %v1457_v62  ;;  %1745 = vst [vmem:[#allocation10 + $0x1e8] sm:$0xff] %v1713_v53  ;;  %v1784_v18 = vadd.f32 %v3012_v11, %v937_v15  ;;  %v1855_v19 = vadd.f32 %v3017_v13, %v1226_v16 }
 0x259   :  { %v941_v20 = vpop.f32.mrf.mxu0  ;;  %v1230_v45 = vpop.f32.mrf.mxu1 }
 0x25a   :  { %1816 = vst [vmem:[#allocation11 + $0x1e0] sm:$0xff] %v1784_v18  ;;  %1887 = vst [vmem:[#allocation11 + $0x1e8] sm:$0xff] %v1855_v19  ;;  %v1458_v6 = vmul.f32 %v3007_v7, %v941_v20  ;;  %v1714_v36 = vmul.f32 %v1681_v5, %v1230_v45 }
 0x25b   :  { %v943_v63 = vpop.f32.mrf.mxu0  ;;  %v1232_v21 = vpop.f32.mrf.mxu1 }
 0x25c   :  { %1490 = vst [vmem:[#allocation10 + $0x1f0] sm:$0xff] %v1458_v6  ;;  %1746 = vst [vmem:[#allocation10 + $0x1f8] sm:$0xff] %v1714_v36  ;;  %v1785_v27 = vadd.f32 %v3012_v11, %v943_v63  ;;  %v1856_v54 = vadd.f32 %v3017_v13, %v1232_v21 }
 0x25d   :  { %2289 = shalt.err (!%p2286_p10)
}
 0x25e   :  { %1900 = dma.vmem_to_hbm [thread:$0]  %s1895_s13, 8192, %s3138_s11, [#allocation4], %s2333_s6, %s2333_s6, %s2334_s18   ;;  %1817 = vst [vmem:[#allocation11 + $0x1f0] sm:$0xff] %v1785_v27  ;;  %1888 = vst [vmem:[#allocation11 + $0x1f8] sm:$0xff] %v1856_v54 }
 0x25f   :  { %s2298_s20 = scalar_lea.vmem %s1907_s15, 8192  ;;  %p2303_p12 = scmp.lt.s32.totalorder %s1907_s15, %s1907_s15 }
 0x260   :  { %p2299_p11 = scmp.ne.s32.totalorder %s1907_s15, %s2298_s20  ;;  %p2304_p13 = scmp.lt.s32.totalorder %s2298_s20, %s2298_s20 }
 0x262   :  { %p2305_p0 = por %p2304_p13, %p2303_p12 }
 0x264   :  { %p2306_p1 = pnand %p2305_p0, %p2299_p11 }
 0x266   :  { %2309 = shalt.err (!%p2306_p1)
}
 0x267   :  { %1912 = dma.vmem_to_hbm [thread:$0]  %s1907_s15, 8192, %s3139_s12, [#allocation12], %s2333_s6, %s2333_s6, %s2334_s18  }
 0x268   :  { %2324 = dma.done.wait [#allocation4], 8192  }
 0x269   :  { %2325 = vsyncadd [#allocation4], 4294959104 }
 0x26a   :  { %2326 = dma.done.wait [#allocation12], 8192  }
 0x26b   :  { %2327 = vsyncadd [#allocation12], 4294959104 }
 0x26c   :  { %1919 = vsyncpa [#allocation3], 1 }
 0x26d   :  { %1920 = vsyncpa [#allocation6], 1 }
 0x26e   :  { %1921 = vsyncpa [#allocation9], 1 }
 0x26f   :  { %1922 = vsyncpa [#allocation4], 1 }
 0x270   :  { %1923 = vsyncpa [#allocation12], 1 }

</bundles_post_ra>
